<compile_context>
chip_gen: v7x
topology: tpu7x:2x2x1
jax: 0.10.0
libtpu: 0.0.40
codegen_flags: <defaults>
</compile_context>

<pallas_src>
import jax
import jax.numpy as jnp
import numpy as np
from jax.experimental import pallas as pl
from jax.experimental.pallas import tpu as pltpu

GRID = 7                      # grid_size
POOL = GRID // 2              # 3   (floor max-pool output size)
C1, C2, FC1 = 16, 32, 64
F1 = C1 * POOL * POOL         # 144: pooled conv1 features (per pool-window offset)
F2 = C2 * POOL * POOL         # 288: conv2 output / fc1 input features
NPIX = GRID * GRID            # 49
HP = jax.lax.Precision.HIGHEST


def _round_up(n, m):
    return ((n + m - 1) // m) * m


# ---------------------------------------------------------------------------
# Pallas kernel: whole forward pass for one batch tile (TB samples on lanes).
# ---------------------------------------------------------------------------
def antenna_cnn_kernel(x_ref, w1_ref, b1_ref, w2_ref, b2_ref,
                       wf1_ref, bf1_ref, wf2_ref, bf2_ref, out_ref):
    x = x_ref[...]                                                    # (49, TB) bf16

    # conv1 (1->16, 3x3, pad=1) at the 36 positions feeding the max-pool; the
    # 4 pool-window offsets are stacked on the sublane axis -> one MXU matmul.
    h1 = jnp.dot(w1_ref[...], x,
                 preferred_element_type=jnp.float32)                  # (4*144, TB) f32

    # MaxPool2d(2) == elementwise max over the four sublane groups (aligned,
    # 144 is a multiple of 8).  ReLU and the per-channel bias commute with the
    # max, so they are applied once afterwards (matches conv->ReLU->pool).
    m = jnp.maximum(jnp.maximum(h1[0 * F1:1 * F1], h1[1 * F1:2 * F1]),
                    jnp.maximum(h1[2 * F1:3 * F1], h1[3 * F1:4 * F1]))
    pooled = jnp.maximum(m + b1_ref[...], 0.0)                        # (144, TB) f32

    # conv2 (16->32, 3x3, pad=1) as one block-Toeplitz matmul; output rows are
    # already in PyTorch NCHW-flatten order (co*9 + i*3 + j).
    h2 = jnp.dot(w2_ref[...], pooled.astype(jnp.bfloat16),
                 preferred_element_type=jnp.float32)                  # (288, TB)
    h2 = jnp.maximum(h2 + b2_ref[...], 0.0)

    # fc1 (288 -> 64); Dropout(0.2) is identity in eval mode.
    h3 = jnp.dot(wf1_ref[...], h2.astype(jnp.bfloat16),
                 preferred_element_type=jnp.float32)                  # (64, TB)
    h3 = jnp.maximum(h3 + bf1_ref[...], 0.0)

    # fc2 (64 -> 1): lane-dense (1, TB) output block, batch on the lane axis.
    out_ref[...] = jnp.dot(wf2_ref[...], h3.astype(jnp.bfloat16),
                           preferred_element_type=jnp.float32) + bf2_ref[...]


# ---------------------------------------------------------------------------
# Host-side weight preparation (PyTorch layout -> kernel layout).
# ---------------------------------------------------------------------------
def _conv1_pool_weight(w1):
    """(4*144, 49): row = g*144 + (i*3+j)*16 + co, col = ii*7 + jj."""
    rows, cols, widx = [], [], []
    co = np.arange(C1)
    for g, (a, b) in enumerate(((0, 0), (0, 1), (1, 0), (1, 1))):
        for i in range(POOL):
            for j in range(POOL):
                for di in range(3):
                    for dj in range(3):
                        ii = 2 * i + a + di - 1
                        jj = 2 * j + b + dj - 1
                        if 0 <= ii < GRID and 0 <= jj < GRID:   # zero padding => skip
                            rows.append(g * F1 + (i * POOL + j) * C1 + co)
                            cols.append(np.full(C1, ii * GRID + jj))
                            widx.append(co * 9 + di * 3 + dj)
    rows = np.concatenate(rows)
    cols = np.concatenate(cols)
    widx = np.concatenate(widx)
    vals = w1.reshape(-1)[widx]                    # w1 flat index = co*9 + di*3 + dj
    return jnp.zeros((4 * F1, NPIX), jnp.float32).at[rows, cols].add(vals)


def _conv2_weight(w2):
    """(288, 144): row = co*9 + i*3 + j (PyTorch flatten), col = (ii*3+jj)*16 + ci."""
    rows, cols, widx = [], [], []
    CO, CI = np.meshgrid(np.arange(C2), np.arange(C1), indexing="ij")
    CO, CI = CO.ravel(), CI.ravel()
    for i in range(POOL):
        for j in range(POOL):
            for di in range(3):
                for dj in range(3):
                    ii = i + di - 1
                    jj = j + dj - 1
                    if 0 <= ii < POOL and 0 <= jj < POOL:       # zero padding => skip
                        rows.append(CO * (POOL * POOL) + i * POOL + j)
                        cols.append((ii * POOL + jj) * C1 + CI)
                        widx.append(CO * (C1 * 9) + CI * 9 + di * 3 + dj)
    rows = np.concatenate(rows)
    cols = np.concatenate(cols)
    widx = np.concatenate(widx)
    vals = w2.reshape(-1)[widx]                    # w2 flat index = co*144 + ci*9 + di*3 + dj
    return jnp.zeros((F2, F1), jnp.float32).at[rows, cols].add(vals)


def prep_params(params):
    """PyTorch-layout params -> kernel layout (pure host/XLA glue)."""
    w1, b1, w2, b2, wf1, bf1, wf2, bf2 = params
    w1k = _conv1_pool_weight(w1).astype(jnp.bfloat16)                 # (576, 49)
    b1k = jnp.tile(b1, POOL * POOL).reshape(F1, 1)                    # (144, 1) f32
    w2k = _conv2_weight(w2).astype(jnp.bfloat16)                      # (288, 144)
    b2k = jnp.repeat(b2, POOL * POOL).reshape(F2, 1)                  # (288, 1) f32
    wf1k = wf1.astype(jnp.bfloat16)                                   # (64, 288)
    bf1k = bf1.reshape(FC1, 1)                                        # (64, 1) f32
    wf2k = wf2.astype(jnp.bfloat16)                                   # (1, 64)
    bf2k = bf2.reshape(1, 1)                                          # (1, 1) f32
    return w1k, b1k, w2k, b2k, wf1k, bf1k, wf2k, bf2k


# ---------------------------------------------------------------------------
# Wrapper
# ---------------------------------------------------------------------------
def antenna_cnn_forward(x, params, block_b=1024):
    """x: (B, 7, 7) (or anything reshapeable to (-1, 49)), returns (B,)."""
    x = jnp.asarray(x, jnp.float32).reshape(-1, NPIX)
    B = x.shape[0]
    # TB: multiple of 128 (lane axis); 1024 keeps per-step VMEM well under the
    # 32 MiB scoped default (safe on v7x's 64 MiB) while amortizing step cost.
    TB = min(block_b, _round_up(max(B, 1), 128))
    B_pad = _round_up(B, TB)
    if B_pad != B:
        x = jnp.pad(x, ((0, B_pad - B), (0, 0)))
    xk = x.T.astype(jnp.bfloat16)                                     # (49, B_pad), batch on lanes
    num_tiles = B_pad // TB

    w1k, b1k, w2k, b2k, wf1k, bf1k, wf2k, bf2k = prep_params(params)

    out = pl.pallas_call(
        antenna_cnn_kernel,
        out_shape=jax.ShapeDtypeStruct((1, B_pad), jnp.float32),
        grid_spec=pltpu.PrefetchScalarGridSpec(
            num_scalar_prefetch=0,
            grid=(num_tiles,),
            in_specs=[
                pl.BlockSpec((NPIX, TB), lambda b: (0, b)),           # x tile
                pl.BlockSpec(w1k.shape, lambda b: (0, 0)),            # weights: resident
                pl.BlockSpec(b1k.shape, lambda b: (0, 0)),
                pl.BlockSpec(w2k.shape, lambda b: (0, 0)),
                pl.BlockSpec(b2k.shape, lambda b: (0, 0)),
                pl.BlockSpec(wf1k.shape, lambda b: (0, 0)),
                pl.BlockSpec(bf1k.shape, lambda b: (0, 0)),
                pl.BlockSpec(wf2k.shape, lambda b: (0, 0)),
                pl.BlockSpec(bf2k.shape, lambda b: (0, 0)),
            ],
            out_specs=pl.BlockSpec((1, TB), lambda b: (0, b)),        # lane-dense output
        ),
        compiler_params=pltpu.CompilerParams(
            dimension_semantics=("parallel",),
            vmem_limit_bytes=32 * 1024 * 1024,
        ),
    )(xk, w1k, b1k, w2k, b2k, wf1k, bf1k, wf2k, bf2k)
    return out[0, :B]                                                 # == .squeeze(-1)


# ---------------------------------------------------------------------------
# Test harness: PyTorch-shaped init + pure-JAX f32 reference.
# ---------------------------------------------------------------------------
def init_params(key):
    """PyTorch-shaped parameters, deterministic (uniform +-1/sqrt(fan_in))."""
    ks = jax.random.split(key, 8)

    def u(k, shape, fan_in):
        bound = 1.0 / np.sqrt(fan_in)
        return jax.random.uniform(k, shape, jnp.float32, -bound, bound)

    w1 = u(ks[0], (C1, 1, 3, 3), 9)
    b1 = u(ks[1], (C1,), 9)
    w2 = u(ks[2], (C2, C1, 3, 3), C1 * 9)
    b2 = u(ks[3], (C2,), C1 * 9)
    wf1 = u(ks[4], (FC1, F2), F2)
    bf1 = u(ks[5], (FC1,), F2)
    wf2 = u(ks[6], (1, FC1), FC1)
    bf2 = u(ks[7], (1,), FC1)
    return w1, b1, w2, b2, wf1, bf1, wf2, bf2


def reference_forward(x, params):
    """Pure-JAX f32 reference matching the PyTorch forward (eval mode)."""
    w1, b1, w2, b2, wf1, bf1, wf2, bf2 = params
    xx = x.reshape(-1, GRID, GRID, 1).astype(jnp.float32)             # NHWC
    y = jax.lax.conv_general_dilated(xx, jnp.transpose(w1, (2, 3, 1, 0)),
                                     (1, 1), "SAME",
                                     dimension_numbers=("NHWC", "HWIO", "NHWC"),
                                     precision=HP)
    y = jax.nn.relu(y + b1)
    y = jax.lax.reduce_window(y, -jnp.inf, jax.lax.max,
                              (1, 2, 2, 1), (1, 2, 2, 1), "VALID")
    y = jax.lax.conv_general_dilated(y, jnp.transpose(w2, (2, 3, 1, 0)),
                                     (1, 1), "SAME",
                                     dimension_numbers=("NHWC", "HWIO", "NHWC"),
                                     precision=HP)
    y = jax.nn.relu(y + b2)
    y = jnp.transpose(y, (0, 3, 1, 2)).reshape(y.shape[0], -1)        # NCHW flatten
    h = jax.nn.relu(y @ wf1.T + bf1)
    return (h @ wf2.T + bf2).squeeze(-1)


if __name__ == "__main__":
    key = jax.random.PRNGKey(0)
    kx, kp = jax.random.split(key)
    B = 8
    x = jax.random.normal(kx, (B, GRID, GRID), jnp.float32)
    params = init_params(kp)

    out = antenna_cnn_forward(x, params)
    out = jax.block_until_ready(out)
    assert out.shape == (B,), out.shape

    ref = reference_forward(x, params)
    # bf16 matmul operands (f32 accumulation) -> slightly looser tolerance.
    np.testing.assert_allclose(np.asarray(out), np.asarray(ref),
                               rtol=2e-2, atol=3e-3)
    print("KERNEL_OK")
</pallas_src>

<mosaic_0001>
module attributes {stable_mosaic.version = 11 : i64} {
  func.func @antenna_cnn_kernel(%arg0: i32, %arg1: memref<49x128xbf16, #tpu.memory_space<vmem>>, %arg2: memref<576x49xbf16, #tpu.memory_space<vmem>>, %arg3: memref<144x1xf32, #tpu.memory_space<vmem>>, %arg4: memref<288x144xbf16, #tpu.memory_space<vmem>>, %arg5: memref<288x1xf32, #tpu.memory_space<vmem>>, %arg6: memref<64x288xbf16, #tpu.memory_space<vmem>>, %arg7: memref<64x1xf32, #tpu.memory_space<vmem>>, %arg8: memref<1x64xbf16, #tpu.memory_space<vmem>>, %arg9: memref<1x1xf32, #tpu.memory_space<vmem>>, %arg10: memref<1x128xf32, #tpu.memory_space<vmem>>) attributes {dimension_semantics = [#tpu.dimension_semantics<parallel>], iteration_bounds = array<i64: 1>, scalar_prefetch = 0 : i64, scratch_operands = 0 : i64, tpu.core_type = #tpu.core_type<tc>, window_params = [{transform_indices = @transform_0, window_bounds = array<i64: 49, 128>}, {pipeline_mode = #tpu.pipeline_mode<synchronous>, transform_indices = @transform_1, window_bounds = array<i64: 576, 49>}, {pipeline_mode = #tpu.pipeline_mode<synchronous>, transform_indices = @transform_2, window_bounds = array<i64: 144, 1>}, {pipeline_mode = #tpu.pipeline_mode<synchronous>, transform_indices = @transform_3, window_bounds = array<i64: 288, 144>}, {pipeline_mode = #tpu.pipeline_mode<synchronous>, transform_indices = @transform_4, window_bounds = array<i64: 288, 1>}, {pipeline_mode = #tpu.pipeline_mode<synchronous>, transform_indices = @transform_5, window_bounds = array<i64: 64, 288>}, {pipeline_mode = #tpu.pipeline_mode<synchronous>, transform_indices = @transform_6, window_bounds = array<i64: 64, 1>}, {pipeline_mode = #tpu.pipeline_mode<synchronous>, transform_indices = @transform_7, window_bounds = array<i64: 1, 64>}, {pipeline_mode = #tpu.pipeline_mode<synchronous>, transform_indices = @transform_8, window_bounds = array<i64: 1, 1>}, {transform_indices = @transform_9, window_bounds = array<i64: 1, 128>}]} {
    %c0 = arith.constant 0 : index
    %c0_0 = arith.constant 0 : index
    %0 = vector.load %arg1[%c0, %c0_0] : memref<49x128xbf16, #tpu.memory_space<vmem>>, vector<49x128xbf16>
    %c0_1 = arith.constant 0 : index
    %c0_2 = arith.constant 0 : index
    %1 = vector.load %arg2[%c0_1, %c0_2] : memref<576x49xbf16, #tpu.memory_space<vmem>>, vector<576x49xbf16>
    %cst = arith.constant dense<0.000000e+00> : vector<576x128xf32>
    %2 = tpu.matmul %1, %0, %cst {dimension_numbers = #tpu.dot_dimension_numbers<[1], [0], [0], [1], [0, 0, 1, 1], [], []>} : vector<576x49xbf16>, vector<49x128xbf16>, vector<576x128xf32> -> vector<576x128xf32>
    %3 = vector.extract_strided_slice %2 {offsets = [0, 0], sizes = [144, 128], strides = [1, 1]} : vector<576x128xf32> to vector<144x128xf32>
    %4 = vector.extract_strided_slice %2 {offsets = [144, 0], sizes = [144, 128], strides = [1, 1]} : vector<576x128xf32> to vector<144x128xf32>
    %5 = arith.maximumf %3, %4 : vector<144x128xf32>
    %6 = vector.extract_strided_slice %2 {offsets = [288, 0], sizes = [144, 128], strides = [1, 1]} : vector<576x128xf32> to vector<144x128xf32>
    %7 = vector.extract_strided_slice %2 {offsets = [432, 0], sizes = [144, 128], strides = [1, 1]} : vector<576x128xf32> to vector<144x128xf32>
    %8 = arith.maximumf %6, %7 : vector<144x128xf32>
    %9 = arith.maximumf %5, %8 : vector<144x128xf32>
    %c0_3 = arith.constant 0 : index
    %c0_4 = arith.constant 0 : index
    %10 = vector.load %arg3[%c0_3, %c0_4] : memref<144x1xf32, #tpu.memory_space<vmem>>, vector<144x1xf32>
    %11 = vector.broadcast %10 : vector<144x1xf32> to vector<144x128xf32>
    %12 = arith.addf %9, %11 : vector<144x128xf32>
    %cst_5 = arith.constant 0.000000e+00 : f32
    %13 = vector.broadcast %cst_5 : f32 to vector<144x128xf32>
    %14 = arith.maximumf %12, %13 : vector<144x128xf32>
    %c0_6 = arith.constant 0 : index
    %c0_7 = arith.constant 0 : index
    %15 = vector.load %arg4[%c0_6, %c0_7] : memref<288x144xbf16, #tpu.memory_space<vmem>>, vector<288x144xbf16>
    %16 = arith.truncf %14 : vector<144x128xf32> to vector<144x128xbf16>
    %cst_8 = arith.constant dense<0.000000e+00> : vector<288x128xf32>
    %17 = tpu.matmul %15, %16, %cst_8 {dimension_numbers = #tpu.dot_dimension_numbers<[1], [0], [0], [1], [0, 0, 1, 1], [], []>} : vector<288x144xbf16>, vector<144x128xbf16>, vector<288x128xf32> -> vector<288x128xf32>
    %c0_9 = arith.constant 0 : index
    %c0_10 = arith.constant 0 : index
    %18 = vector.load %arg5[%c0_9, %c0_10] : memref<288x1xf32, #tpu.memory_space<vmem>>, vector<288x1xf32>
    %19 = vector.broadcast %18 : vector<288x1xf32> to vector<288x128xf32>
    %20 = arith.addf %17, %19 : vector<288x128xf32>
    %cst_11 = arith.constant 0.000000e+00 : f32
    %21 = vector.broadcast %cst_11 : f32 to vector<288x128xf32>
    %22 = arith.maximumf %20, %21 : vector<288x128xf32>
    %c0_12 = arith.constant 0 : index
    %c0_13 = arith.constant 0 : index
    %23 = vector.load %arg6[%c0_12, %c0_13] : memref<64x288xbf16, #tpu.memory_space<vmem>>, vector<64x288xbf16>
    %24 = arith.truncf %22 : vector<288x128xf32> to vector<288x128xbf16>
    %cst_14 = arith.constant dense<0.000000e+00> : vector<64x128xf32>
    %25 = tpu.matmul %23, %24, %cst_14 {dimension_numbers = #tpu.dot_dimension_numbers<[1], [0], [0], [1], [0, 0, 1, 1], [], []>} : vector<64x288xbf16>, vector<288x128xbf16>, vector<64x128xf32> -> vector<64x128xf32>
    %c0_15 = arith.constant 0 : index
    %c0_16 = arith.constant 0 : index
    %26 = vector.load %arg7[%c0_15, %c0_16] : memref<64x1xf32, #tpu.memory_space<vmem>>, vector<64x1xf32>
    %27 = vector.broadcast %26 : vector<64x1xf32> to vector<64x128xf32>
    %28 = arith.addf %25, %27 : vector<64x128xf32>
    %cst_17 = arith.constant 0.000000e+00 : f32
    %29 = vector.broadcast %cst_17 : f32 to vector<64x128xf32>
    %30 = arith.maximumf %28, %29 : vector<64x128xf32>
    %c0_18 = arith.constant 0 : index
    %c0_19 = arith.constant 0 : index
    %31 = vector.load %arg8[%c0_18, %c0_19] : memref<1x64xbf16, #tpu.memory_space<vmem>>, vector<1x64xbf16>
    %32 = arith.truncf %30 : vector<64x128xf32> to vector<64x128xbf16>
    %cst_20 = arith.constant dense<0.000000e+00> : vector<1x128xf32>
    %33 = tpu.matmul %31, %32, %cst_20 {dimension_numbers = #tpu.dot_dimension_numbers<[1], [0], [0], [1], [0, 0, 1, 1], [], []>} : vector<1x64xbf16>, vector<64x128xbf16>, vector<1x128xf32> -> vector<1x128xf32>
    %c0_21 = arith.constant 0 : index
    %c0_22 = arith.constant 0 : index
    %34 = vector.load %arg9[%c0_21, %c0_22] : memref<1x1xf32, #tpu.memory_space<vmem>>, vector<1x1xf32>
    %35 = vector.broadcast %34 : vector<1x1xf32> to vector<1x128xf32>
    %36 = arith.addf %33, %35 : vector<1x128xf32>
    %c0_23 = arith.constant 0 : index
    %c0_24 = arith.constant 0 : index
    %37 = vector.load %arg10[%c0_23, %c0_24] : memref<1x128xf32, #tpu.memory_space<vmem>>, vector<1x128xf32>
    tpu.vector_store %arg10[%c0_23, %c0_24], %36 {strides = array<i32>} : memref<1x128xf32, #tpu.memory_space<vmem>>, vector<1x128xf32>,
    return
  }
  func.func @transform_0(%arg0: i32) -> (i32, i32) {
    %c0_i32 = arith.constant 0 : i32
    %c0_i32_0 = arith.constant 0 : i32
    return %c0_i32, %arg0 : i32, i32
  }
  func.func @transform_1(%arg0: i32) -> (i32, i32) {
    %c0_i32 = arith.constant 0 : i32
    %c0_i32_0 = arith.constant 0 : i32
    %c0_i32_1 = arith.constant 0 : i32
    return %c0_i32, %c0_i32_0 : i32, i32
  }
  func.func @transform_2(%arg0: i32) -> (i32, i32) {
    %c0_i32 = arith.constant 0 : i32
    %c0_i32_0 = arith.constant 0 : i32
    %c0_i32_1 = arith.constant 0 : i32
    return %c0_i32, %c0_i32_0 : i32, i32
  }
  func.func @transform_3(%arg0: i32) -> (i32, i32) {
    %c0_i32 = arith.constant 0 : i32
    %c0_i32_0 = arith.constant 0 : i32
    %c0_i32_1 = arith.constant 0 : i32
    return %c0_i32, %c0_i32_0 : i32, i32
  }
  func.func @transform_4(%arg0: i32) -> (i32, i32) {
    %c0_i32 = arith.constant 0 : i32
    %c0_i32_0 = arith.constant 0 : i32
    %c0_i32_1 = arith.constant 0 : i32
    return %c0_i32, %c0_i32_0 : i32, i32
  }
  func.func @transform_5(%arg0: i32) -> (i32, i32) {
    %c0_i32 = arith.constant 0 : i32
    %c0_i32_0 = arith.constant 0 : i32
    %c0_i32_1 = arith.constant 0 : i32
    return %c0_i32, %c0_i32_0 : i32, i32
  }
  func.func @transform_6(%arg0: i32) -> (i32, i32) {
    %c0_i32 = arith.constant 0 : i32
    %c0_i32_0 = arith.constant 0 : i32
    %c0_i32_1 = arith.constant 0 : i32
    return %c0_i32, %c0_i32_0 : i32, i32
  }
  func.func @transform_7(%arg0: i32) -> (i32, i32) {
    %c0_i32 = arith.constant 0 : i32
    %c0_i32_0 = arith.constant 0 : i32
    %c0_i32_1 = arith.constant 0 : i32
    return %c0_i32, %c0_i32_0 : i32, i32
  }
  func.func @transform_8(%arg0: i32) -> (i32, i32) {
    %c0_i32 = arith.constant 0 : i32
    %c0_i32_0 = arith.constant 0 : i32
    %c0_i32_1 = arith.constant 0 : i32
    return %c0_i32, %c0_i32_0 : i32, i32
  }
  func.func @transform_9(%arg0: i32) -> (i32, i32) {
    %c0_i32 = arith.constant 0 : i32
    %c0_i32_0 = arith.constant 0 : i32
    return %c0_i32, %arg0 : i32, i32
  }
}

</mosaic_0001>

<bundles_post_ra>
// kernel: tpu_custom_call.1
= control target key start
LH: loop header
LB: loop body
LE: loop exit
PB: predicated region body
PF: predicated region fallthrough
CT: control target
= control target key end

     0   :  { %s3354_s0 = inlined_call_operand.vmem [shape: bf16[49,128], index: 0, kind: input, shape index: {}]   ;;  %s3355_s1 = inlined_call_operand.vmem [shape: bf16[576,49], index: 1, kind: input, shape index: {}]   ;;  %s3356_s2 = inlined_call_operand.vmem [shape: f32[144,1], index: 2, kind: input, shape index: {}]   ;;  %s3357_s3 = inlined_call_operand.vmem [shape: bf16[288,144], index: 3, kind: input, shape index: {}]   ;;  %s3358_s4 = inlined_call_operand.vmem [shape: f32[288,1], index: 4, kind: input, shape index: {}]   ;;  %s3359_s5 = inlined_call_operand.vmem [shape: bf16[64,288], index: 5, kind: input, shape index: {}]   ;;  %s3360_s6 = inlined_call_operand.vmem [shape: f32[64,1], index: 6, kind: input, shape index: {}]   ;;  %s3361_s7 = inlined_call_operand.vmem [shape: bf16[1,64], index: 7, kind: input, shape index: {}]   ;;  %s3362_s8 = inlined_call_operand.<no memory space> [shape: f32[1,1], index: 8, kind: input, shape index: {}]   ;;  %s3363_s9 = inlined_call_operand.hbm [shape: f32[1,128], index: 9, kind: output, shape index: {}]  }
   0x1   :  { %v14_v0 = vstv %s3362_s8 }
   0x2   :  { %15 = vst [vmem:[#allocation2] sm:$0x1] %v14_v0 }
   0x3   :  { %v2356_v1 = vld [vmem:[%s3354_s0] sm:$0xff]   ;;  %vm425_vm0 = vcmask 1040384   ;;  %v2357_v2 = vld [vmem:[%s3354_s0 + $0x8] sm:$0xff]   ;;  %v2358_v3 = vld [vmem:[%s3354_s0 + $0x10] sm:$0xff]   ;;  %v3364_v4 = vmov 0   ;;  %vm316_vm1 = vcmask 400384  }
   0x4   :  { %2246 = vmatprep.subr.bf16.mxu0 %v2356_v1  ;;  %2354 = vset.pattern.permute.xlu0 %v3364_v4  ;;  %v2359_v5 = vld [vmem:[%s3354_s0 + $0x18] ss:$0 sps:$4 sm:$0x11]   ;;  %v2360_v6 = vld [vmem:[%s3355_s1] sm:$0xff]   ;;  %v427_v7 = vsel %vm425_vm0, 65535, %v3364_v4  ;;  %v2361_v9 = vld [vmem:[%s3355_s1 + $0x8] sm:$0xff]  }
   0x5   :  { %2247 = vmatpush3.bf16.msra.mxu0 %v2356_v1  ;;  %2355 = vset.pattern.permute.xlu1 %v3364_v4  ;;  %v429_v8 = vand.u32 %v2359_v5, %v427_v7  ;;  %v2362_v10 = vld [vmem:[%s3355_s1 + $0x10] sm:$0xff]   ;;  %v806_v11 = vld [vmem:[%s3356_s2] sm:$0xff]  ;;  %v2363_v12 = vld [vmem:[%s3355_s1 + $0x18] sm:$0xff]  }
   0x6   :  { %2248 = vmatprep.subr.bf16.mxu0 %v2357_v2  ;;  %1428 = vmatprep.subr.bf16.mxu1 %v3364_v4  ;;  %v2364_v13 = vld [vmem:[%s3355_s1 + $0x20] sm:$0xff]   ;;  %v807_v14 = vld [vmem:[%s3356_s2 + $0x8] sm:$0xff]  ;;  %v808_v15 = vld [vmem:[%s3356_s2 + $0x10] sm:$0xff] }
   0x7   :  { %2254 = vmatprep.mubr.msk.bf16.mxu0 %vm316_vm1, %v2360_v6  ;;  %826 = vperm.xlu0 %2354, %v806_v11   ;;  %v810_v16 = vld [vmem:[%s3356_s2 + $0x20] sm:$0xff]  ;;  %v809_v17 = vld [vmem:[%s3356_s2 + $0x18] sm:$0xff]  ;;  %v2365_v18 = vld [vmem:[%s3355_s1 + $0x28] sm:$0xff]  }
   0x8   :  { %836 = vperm.xlu1 %2355, %v808_v15   ;;  %v811_v19 = vld [vmem:[%s3356_s2 + $0x28] sm:$0xff]  ;;  %v2366_v20 = vld [vmem:[%s3355_s1 + $0x30] sm:$0xff]   ;;  %v813_v22 = vld [vmem:[%s3356_s2 + $0x38] sm:$0xff] }
   0x9   :  { %2249 = vmatpush3.bf16.msra.mxu0 %v2357_v2  ;;  %v812_v21 = vld [vmem:[%s3356_s2 + $0x30] sm:$0xff]  ;;  %v814_v23 = vld [vmem:[%s3356_s2 + $0x40] sm:$0xff]  ;;  %v2367_v24 = vld [vmem:[%s3355_s1 + $0x38] sm:$0xff]  }
   0xa   :  { %2250 = vmatprep.subr.bf16.mxu0 %v2358_v3  ;;  %v2368_v25 = vld [vmem:[%s3355_s1 + $0x40] sm:$0xff]   ;;  %v815_v26 = vld [vmem:[%s3356_s2 + $0x48] sm:$0xff]  ;;  %v816_v27 = vld [vmem:[%s3356_s2 + $0x50] sm:$0xff] }
   0xb   :  { %831 = vperm.xlu0 %2354, %v807_v14   ;;  %v817_v28 = vld [vmem:[%s3356_s2 + $0x58] sm:$0xff]  ;;  %v818_v29 = vld [vmem:[%s3356_s2 + $0x60] sm:$0xff]  ;;  %v2369_v30 = vld [vmem:[%s3355_s1 + $0x48] sm:$0xff]  }
   0xc   :  { %841 = vperm.xlu1 %2355, %v809_v17   ;;  %v819_v31 = vld [vmem:[%s3356_s2 + $0x68] sm:$0xff]  ;;  %v2370_v32 = vld [vmem:[%s3355_s1 + $0x50] sm:$0xff]   ;;  %v821_v34 = vld [vmem:[%s3356_s2 + $0x78] sm:$0xff] }
   0xd   :  { %2251 = vmatpush3.bf16.msra.mxu0 %v2358_v3  ;;  %v820_v33 = vld [vmem:[%s3356_s2 + $0x70] sm:$0xff]  ;;  %v822_v35 = vld [vmem:[%s3356_s2 + $0x80] sm:$0xff]  ;;  %v2371_v36 = vld [vmem:[%s3355_s1 + $0x58] sm:$0xff]  }
   0xe   :  { %2252 = vmatprep.subr.bf16.mxu0 %v429_v8  ;;  %v823_v37 = vld [vmem:[%s3356_s2 + $0x88] sm:$0xff]  ;;  %v2372_v38 = vld [vmem:[%s3355_s1 + $0x60] sm:$0xff]   ;;  %v2374_v44 = vld [vmem:[%s3355_s1 + $0x70] sm:$0xff]  }
   0xf   :  { %846 = vperm.xlu0 %2354, %v810_v16   ;;  %v1011_v39 = vld [vmem:[%s3358_s4 + $0x80] sm:$0xff]  ;;  %v1012_v40 = vld [vmem:[%s3358_s4 + $0x88] sm:$0xff]  ;;  %v1013_v45 = vld [vmem:[%s3358_s4 + $0x90] sm:$0xff] }
  0x10   :  { %851 = vperm.xlu1 %2355, %v811_v19   ;;  %v995_v41 = vld [vmem:[%s3358_s4] sm:$0xff]  ;;  %v2373_v42 = vld [vmem:[%s3355_s1 + $0x68] sm:$0xff]   ;;  %v1014_v46 = vld [vmem:[%s3358_s4 + $0x98] sm:$0xff] }
  0x11   :  { %2253 = vmatpush3.bf16.msra.mxu0 %v429_v8  ;;  %v996_v43 = vld [vmem:[%s3358_s4 + $0x8] sm:$0xff]  ;;  %v997_v47 = vld [vmem:[%s3358_s4 + $0x10] sm:$0xff]  ;;  %v2375_v48 = vld [vmem:[%s3355_s1 + $0x78] sm:$0xff]  }
  0x12   :  { %v998_v49 = vld [vmem:[%s3358_s4 + $0x18] sm:$0xff]  ;;  %v2376_v50 = vld [vmem:[%s3355_s1 + $0x80] sm:$0xff]   ;;  %v1016_v52 = vld [vmem:[%s3358_s4 + $0xa8] sm:$0xff] }
  0x13   :  { %856 = vperm.xlu0 %2354, %v812_v21   ;;  %v1015_v51 = vld [vmem:[%s3358_s4 + $0xa0] sm:$0xff]  ;;  %v2377_v54 = vld [vmem:[%s3355_s1 + $0x88] sm:$0xff]  }
  0x14   :  { %2255 = vmatmul.mubr.msk.bf16.vlgmr.msra.gmra.mrb[0].mxu0 %vm316_vm1, %v2361_v9  ;;  %861 = vperm.xlu1 %2355, %v813_v22   ;;  %v999_v53 = vld [vmem:[%s3358_s4 + $0x20] sm:$0xff]  ;;  %v1000_v55 = vld [vmem:[%s3358_s4 + $0x28] sm:$0xff] }
  0x15   :  { %2258 = vmatprep.mubr.msk.bf16.mxu0 %vm316_vm1, %v2362_v10 }
  0x17   :  { %866 = vperm.xlu0 %2354, %v814_v23  }
  0x18   :  { %871 = vperm.xlu1 %2355, %v815_v26  }
  0x1b   :  { %876 = vperm.xlu0 %2354, %v816_v27  }
  0x1c   :  { %2259 = vmatmul.mubr.msk.bf16.gmra.mrb[4].mxu0 %vm316_vm1, %v2363_v12  ;;  %881 = vperm.xlu1 %2355, %v817_v28  }
  0x1d   :  { %2262 = vmatprep.mubr.msk.bf16.mxu0 %vm316_vm1, %v2364_v13 }
  0x1f   :  { %886 = vperm.xlu0 %2354, %v818_v29  }
  0x20   :  { %891 = vperm.xlu1 %2355, %v819_v31  }
  0x23   :  { %896 = vperm.xlu0 %2354, %v820_v33  }
  0x24   :  { %2263 = vmatmul.mubr.msk.bf16.gmra.mrb[8].mxu0 %vm316_vm1, %v2365_v18  ;;  %901 = vperm.xlu1 %2355, %v821_v34  }
  0x25   :  { %2266 = vmatprep.mubr.msk.bf16.mxu0 %vm316_vm1, %v2366_v20 }
  0x27   :  { %906 = vperm.xlu0 %2354, %v822_v35  }
  0x28   :  { %911 = vperm.xlu1 %2355, %v823_v37  }
  0x2b   :  { %1113 = vperm.xlu0 %2354, %v1011_v39  }
  0x2c   :  { %2267 = vmatmul.mubr.msk.bf16.gmra.mrb[12].mxu0 %vm316_vm1, %v2367_v24  ;;  %1118 = vperm.xlu1 %2355, %v1012_v40  }
  0x2d   :  { %2270 = vmatprep.mubr.msk.bf16.mxu0 %vm316_vm1, %v2368_v25 }
  0x2f   :  { %1033 = vperm.xlu0 %2354, %v995_v41  }
  0x30   :  { %1038 = vperm.xlu1 %2355, %v996_v43  }
  0x33   :  { %1123 = vperm.xlu0 %2354, %v1013_v45  }
  0x34   :  { %2271 = vmatmul.mubr.msk.bf16.gmra.mrb[16].mxu0 %vm316_vm1, %v2369_v30  ;;  %1128 = vperm.xlu1 %2355, %v1014_v46  }
  0x35   :  { %2274 = vmatprep.mubr.msk.bf16.mxu0 %vm316_vm1, %v2370_v32 }
  0x37   :  { %1043 = vperm.xlu0 %2354, %v997_v47  }
  0x38   :  { %1048 = vperm.xlu1 %2355, %v998_v49  }
  0x3b   :  { %1133 = vperm.xlu0 %2354, %v1015_v51  }
  0x3c   :  { %2275 = vmatmul.mubr.msk.bf16.gmra.mrb[20].mxu0 %vm316_vm1, %v2371_v36  ;;  %1138 = vperm.xlu1 %2355, %v1016_v52  }
  0x3d   :  { %2278 = vmatprep.mubr.msk.bf16.mxu0 %vm316_vm1, %v2372_v38 }
  0x3f   :  { %1053 = vperm.xlu0 %2354, %v999_v53  }
  0x44   :  { %2279 = vmatmul.mubr.msk.bf16.gmra.mrb[24].mxu0 %vm316_vm1, %v2373_v42 }
  0x45   :  { %2282 = vmatprep.mubr.msk.bf16.mxu0 %vm316_vm1, %v2374_v44 }
  0x4c   :  { %2283 = vmatmul.mubr.msk.bf16.gmra.mrb[28].mxu0 %vm316_vm1, %v2375_v48 }
  0x4d   :  { %2286 = vmatprep.mubr.msk.bf16.mxu0 %vm316_vm1, %v2376_v50 }
  0x4e   :  { %16 = vsyncpa [#allocation4], 0  ;;  %v2378_v56 = vld [vmem:[%s3355_s1 + $0x90] sm:$0xff]   ;;  %1058 = vperm.xlu1 %2355, %v1000_v55   ;;  %v1018_v58 = vld [vmem:[%s3358_s4 + $0xb8] sm:$0xff]  ;;  %vm1373_vm2 = vcmask 130048   ;;  %vm1783_vm3 = vcmask 261120  }
  0x4f   :  { %v1017_v57 = vld [vmem:[%s3358_s4 + $0xb0] sm:$0xff]  ;;  %v2379_v60 = vld [vmem:[%s3355_s1 + $0x98] sm:$0xff]   ;;  %v2380_v62 = vld [vmem:[%s3355_s1 + $0xa0] sm:$0xff]   ;;  %vm2492_vm4 = vmmov 0   ;;  %vm1949_vm5 = vcmask 523264   ;;  %s2493_s13 = smov [#allocation3]  }
  0x50   :  { %1143 = vperm.xlu0 %2354, %v1017_v57   ;;  %v1001_v59 = vld [vmem:[%s3358_s4 + $0x30] sm:$0xff]  ;;  %v1002_v61 = vld [vmem:[%s3358_s4 + $0x38] sm:$0xff]  ;;  %v1019_v63 = vld [vmem:[%s3358_s4 + $0xc0] sm:$0xff]  ;;  %s2000_s14 = sshll.u32 %s2493_s13, 4  ;;  %s2001_s14 = int_to_ptr.vmem [resolvable:$true] %s2000_s14 }
  0x51   :  { %v1020_v0 = vld [vmem:[%s3358_s4 + $0xc8] sm:$0xff]  ;;  %v1003_v1 = vld [vmem:[%s3358_s4 + $0x40] sm:$0xff]  ;;  %v2382_v5 = vld [vmem:[%s3355_s1 + $0xb0] sm:$0xff]   ;;  %s2466_s15 = scalar_lea.vmem %s2001_s14, 16  ;;  %p2471_p1 = scmp.lt.s32.totalorder %s2001_s14, %s2001_s14 }
  0x52   :  { %1148 = vperm.xlu1 %2355, %v1018_v58   ;;  %v2381_v2 = vld [vmem:[%s3355_s1 + $0xa8] sm:$0xff]   ;;  %v1021_v6 = vld [vmem:[%s3358_s4 + $0xd0] sm:$0xff]  ;;  %v1022_v7 = vld [vmem:[%s3358_s4 + $0xd8] sm:$0xff]  ;;  %p2467_p0 = scmp.ne.s32.totalorder %s2001_s14, %s2466_s15 }
  0x53   :  { %v1004_v3 = vld [vmem:[%s3358_s4 + $0x48] sm:$0xff]  ;;  %v1005_v8 = vld [vmem:[%s3358_s4 + $0x50] sm:$0xff]  ;;  %v2383_v9 = vld [vmem:[%s3355_s1 + $0xb8] sm:$0xff]  }
  0x54   :  { %2287 = vmatmul.mubr.msk.bf16.gmra.mrb[32].mxu0 %vm316_vm1, %v2377_v54  ;;  %1063 = vperm.xlu0 %2354, %v1001_v59   ;;  %v1006_v10 = vld [vmem:[%s3358_s4 + $0x58] sm:$0xff]  ;;  %v2384_v11 = vld [vmem:[%s3355_s1 + $0xc0] sm:$0xff]   ;;  %v1024_v13 = vld [vmem:[%s3358_s4 + $0xe8] sm:$0xff] }
  0x55   :  { %2290 = vmatprep.mubr.msk.bf16.mxu0 %vm316_vm1, %v2378_v56  ;;  %v1023_v12 = vld [vmem:[%s3358_s4 + $0xe0] sm:$0xff]  ;;  %v2385_v15 = vld [vmem:[%s3355_s1 + $0xc8] sm:$0xff]   ;;  %v2386_v17 = vld [vmem:[%s3355_s1 + $0xd0] sm:$0xff]  }
  0x56   :  { %1068 = vperm.xlu1 %2355, %v1002_v61   ;;  %v1007_v14 = vld [vmem:[%s3358_s4 + $0x60] sm:$0xff]  ;;  %v1008_v16 = vld [vmem:[%s3358_s4 + $0x68] sm:$0xff]  ;;  %v1025_v18 = vld [vmem:[%s3358_s4 + $0xf0] sm:$0xff] }
  0x57   :  { %v1026_v19 = vld [vmem:[%s3358_s4 + $0xf8] sm:$0xff]  ;;  %v1009_v20 = vld [vmem:[%s3358_s4 + $0x70] sm:$0xff]  ;;  %v2388_v23 = vld [vmem:[%s3355_s1 + $0xe0] sm:$0xff]  }
  0x58   :  { %1153 = vperm.xlu0 %2354, %v1019_v63   ;;  %v2387_v21 = vld [vmem:[%s3355_s1 + $0xd8] sm:$0xff]   ;;  %v1027_v24 = vld [vmem:[%s3358_s4 + $0x100] sm:$0xff]  ;;  %v1028_v25 = vld [vmem:[%s3358_s4 + $0x108] sm:$0xff] }
  0x59   :  { %v1010_v22 = vld [vmem:[%s3358_s4 + $0x78] sm:$0xff]  ;;  %v1029_v26 = vld [vmem:[%s3358_s4 + $0x110] sm:$0xff]  ;;  %v2389_v27 = vld [vmem:[%s3355_s1 + $0xe8] sm:$0xff]  }
  0x5a   :  { %1158 = vperm.xlu1 %2355, %v1020_v0   ;;  %v1030_v28 = vld [vmem:[%s3358_s4 + $0x118] sm:$0xff]  ;;  %v2390_v29 = vld [vmem:[%s3355_s1 + $0xf0] sm:$0xff]   ;;  %v1675_v30 = vld [vmem:[%s3360_s6] sm:$0xff] }
  0x5b   :  { %v1676_v31 = vld [vmem:[%s3360_s6 + $0x8] sm:$0xff]  ;;  %v1677_v32 = vld [vmem:[%s3360_s6 + $0x10] sm:$0xff]  ;;  %v2391_v33 = vld [vmem:[%s3355_s1 + $0xf8] sm:$0xff]  }
  0x5c   :  { %2291 = vmatmul.mubr.msk.bf16.gmra.mrb[36].mxu0 %vm316_vm1, %v2379_v60  ;;  %1073 = vperm.xlu0 %2354, %v1003_v1   ;;  %v1678_v34 = vld [vmem:[%s3360_s6 + $0x18] sm:$0xff]  ;;  %v2392_v35 = vld [vmem:[%s3355_s1 + $0x100] sm:$0xff]   ;;  %v1680_v37 = vld [vmem:[%s3360_s6 + $0x28] sm:$0xff] }
  0x5d   :  { %2294 = vmatprep.mubr.msk.bf16.mxu0 %vm316_vm1, %v2380_v62  ;;  %v1679_v36 = vld [vmem:[%s3360_s6 + $0x20] sm:$0xff]  ;;  %v1681_v38 = vld [vmem:[%s3360_s6 + $0x30] sm:$0xff]  ;;  %v2393_v39 = vld [vmem:[%s3355_s1 + $0x108] sm:$0xff]  }
  0x5e   :  { %1078 = vperm.xlu1 %2355, %v1004_v3   ;;  %v1682_v40 = vld [vmem:[%s3360_s6 + $0x38] sm:$0xff]  ;;  %v2394_v41 = vld [vmem:[%s3355_s1 + $0x110] sm:$0xff]   ;;  %v1939_v42 = vld [vmem:[#allocation2] sm:$0x1] }
  0x5f   :  { %v2395_v43 = vld [vmem:[%s3355_s1 + $0x118] sm:$0xff]   ;;  %v2398_v59 = vld [vmem:[%s3357_s3 + $0x4] ss:$8 sps:$4 sm:$0xff]  }
  0x60   :  { %1163 = vperm.xlu0 %2354, %v1021_v6   ;;  %2120 = vmatprep.mubr.msk.bf16.mxu1 %vm1373_vm2, %v2398_v59 }
  0x62   :  { %1168 = vperm.xlu1 %2355, %v1022_v7  }
  0x64   :  { %2295 = vmatmul.mubr.msk.bf16.gmra.mrb[40].mxu0 %vm316_vm1, %v2381_v2  ;;  %1083 = vperm.xlu0 %2354, %v1005_v8  }
  0x65   :  { %2298 = vmatprep.mubr.msk.bf16.mxu0 %vm316_vm1, %v2382_v5 }
  0x66   :  { %1088 = vperm.xlu1 %2355, %v1006_v10  }
  0x68   :  { %1173 = vperm.xlu0 %2354, %v1023_v12  }
  0x6a   :  { %1178 = vperm.xlu1 %2355, %v1024_v13  }
  0x6c   :  { %2299 = vmatmul.mubr.msk.bf16.gmra.mrb[44].mxu0 %vm316_vm1, %v2383_v9  ;;  %1093 = vperm.xlu0 %2354, %v1007_v14  }
  0x6d   :  { %2302 = vmatprep.mubr.msk.bf16.mxu0 %vm316_vm1, %v2384_v11 }
  0x6e   :  { %1098 = vperm.xlu1 %2355, %v1008_v16  }
  0x70   :  { %1183 = vperm.xlu0 %2354, %v1025_v18  }
  0x72   :  { %1188 = vperm.xlu1 %2355, %v1026_v19  }
  0x74   :  { %2303 = vmatmul.mubr.msk.bf16.gmra.mrb[48].mxu0 %vm316_vm1, %v2385_v15  ;;  %1103 = vperm.xlu0 %2354, %v1009_v20  }
  0x75   :  { %2306 = vmatprep.mubr.msk.bf16.mxu0 %vm316_vm1, %v2386_v17 }
  0x76   :  { %1108 = vperm.xlu1 %2355, %v1010_v22  }
  0x78   :  { %1193 = vperm.xlu0 %2354, %v1027_v24  }
  0x7a   :  { %1198 = vperm.xlu1 %2355, %v1028_v25  }
  0x7c   :  { %2307 = vmatmul.mubr.msk.bf16.gmra.mrb[52].mxu0 %vm316_vm1, %v2387_v21  ;;  %1203 = vperm.xlu0 %2354, %v1029_v26  }
  0x7d   :  { %2310 = vmatprep.mubr.msk.bf16.mxu0 %vm316_vm1, %v2388_v23 }
  0x7e   :  { %1208 = vperm.xlu1 %2355, %v1030_v28  }
  0x80   :  { %1685 = vperm.xlu0 %2354, %v1675_v30  }
  0x82   :  { %1690 = vperm.xlu1 %2355, %v1676_v31  }
  0x84   :  { %2311 = vmatmul.mubr.msk.bf16.gmra.mrb[56].mxu0 %vm316_vm1, %v2389_v27  ;;  %1695 = vperm.xlu0 %2354, %v1677_v32  }
  0x85   :  { %2314 = vmatprep.mubr.msk.bf16.mxu0 %vm316_vm1, %v2390_v29 }
  0x86   :  { %1700 = vperm.xlu1 %2355, %v1678_v34   ;;  %v827_v27 = vpop.permute.xlu0 %826 }
  0x87   :  { %v837_v25 = vpop.permute.xlu1 %836 }
  0x88   :  { %1705 = vperm.xlu0 %2354, %v1679_v36  }
  0x8a   :  { %1710 = vperm.xlu1 %2355, %v1680_v37   ;;  %v832_v21 = vpop.permute.xlu0 %831 }
  0x8b   :  { %v842_v15 = vpop.permute.xlu1 %841 }
  0x8c   :  { %2315 = vmatmul.mubr.msk.bf16.gmra.mrb[60].mxu0 %vm316_vm1, %v2391_v33  ;;  %1715 = vperm.xlu0 %2354, %v1681_v38  }
  0x8d   :  { %2318 = vmatprep.mubr.msk.bf16.mxu0 %vm316_vm1, %v2392_v35 }
  0x8e   :  { %1720 = vperm.xlu1 %2355, %v1682_v40   ;;  %v847_v13 = vpop.permute.xlu0 %846 }
  0x8f   :  { %v852_v7 = vpop.permute.xlu1 %851 }
  0x90   :  { %1942 = vperm.xlu0 %2354, %v1939_v42  }
  0x94   :  { %2319 = vmatmul.mubr.msk.bf16.gmra.mrb[64].mxu0 %vm316_vm1, %v2393_v39 }
  0x95   :  { %2322 = vmatprep.mubr.msk.bf16.mxu0 %vm316_vm1, %v2394_v41 }
  0x9c   :  { %2323 = vmatmul.mubr.msk.bf16.gmra.mrb[68].mxu0 %vm316_vm1, %v2395_v43 }
  0xe7   :  { %v2893_v44 = vpop.f32.mrb[0].mxu0 }
  0xe8   :  { %v2895_v45 = vpop.f32.mrb[1].mxu0 }
  0xe9   :  { %v2897_v46 = vpop.f32.mrb[2].mxu0 }
  0xea   :  { %v2899_v47 = vpop.f32.mrb[3].mxu0 }
  0xef   :  { %v2901_v48 = vpop.f32.mrb[4].mxu0 }
  0xf0   :  { %v2903_v49 = vpop.f32.mrb[5].mxu0 }
  0xf1   :  { %v2905_v50 = vpop.f32.mrb[6].mxu0 }
  0xf2   :  { %v2907_v51 = vpop.f32.mrb[7].mxu0 }
  0xf7   :  { %v2909_v52 = vpop.f32.mrb[8].mxu0 }
  0xf8   :  { %v2911_v53 = vpop.f32.mrb[9].mxu0 }
  0xf9   :  { %v2913_v54 = vpop.f32.mrb[10].mxu0 }
  0xfa   :  { %3376 = vst [vmem:[#allocation6_spill] sm:$0xff] %v2913_v54  ;;  %v2915_v55 = vpop.f32.mrb[11].mxu0 }
  0xff   :  { %v2917_v56 = vpop.f32.mrb[12].mxu0 }
 0x100   :  { %3377 = vst [vmem:[#allocation7_spill] sm:$0xff] %v2917_v56  ;;  %v2919_v57 = vpop.f32.mrb[13].mxu0 }
 0x101   :  { %v2921_v58 = vpop.f32.mrb[14].mxu0 }
 0x102   :  { %3378 = vst [vmem:[#allocation8_spill] sm:$0xff] %v2921_v58  ;;  %v2926_v60 = vpop.f32.mrb[15].mxu0 }
 0x107   :  { %v2929_v61 = vpop.f32.mrb[16].mxu0 }
 0x108   :  { %v752_v62 = vmax.f32 %v2895_v45, %v2929_v61  ;;  %v2933_v63 = vpop.f32.mrb[17].mxu0 }
 0x109   :  { %3379 = vst [vmem:[#allocation9_spill] sm:$0xff] %v2933_v63  ;;  %v2935_v0 = vpop.f32.mrb[18].mxu0 }
 0x10a   :  { %v2939_v2 = vpop.f32.mrb[19].mxu0 }
 0x10b   :  { %3380 = vst [vmem:[#allocation10_spill] sm:$0xff] %v2939_v2 }
 0x10f   :  { %v2941_v3 = vpop.f32.mrb[20].mxu0 }
 0x110   :  { %v2945_v6 = vpop.f32.mrb[21].mxu0  ;;  %v3390_v45 = vmax.f32 %v2903_v49, %v2941_v3  ;;  %v3394_v3 = vmov 0  }
 0x111   :  { %v2949_v8 = vpop.f32.mrb[22].mxu0 }
 0x112   :  { %v2953_v10 = vpop.f32.mrb[23].mxu0 }
 0x113   :  { %v3393_v49 = vmax.f32 %v2897_v46, %v2953_v10 }
 0x117   :  { %v2957_v12 = vpop.f32.mrb[24].mxu0 }
 0x118   :  { %v2961_v14 = vpop.f32.mrb[25].mxu0 }
 0x119   :  { %v2965_v16 = vpop.f32.mrb[26].mxu0 }
 0x11a   :  { %v2969_v18 = vpop.f32.mrb[27].mxu0 }
 0x11f   :  { %v2973_v20 = vpop.f32.mrb[28].mxu0 }
 0x120   :  { %v2977_v22 = vpop.f32.mrb[29].mxu0 }
 0x121   :  { %v2981_v24 = vpop.f32.mrb[30].mxu0 }
 0x122   :  { %v2985_v26 = vpop.f32.mrb[31].mxu0 }
 0x123   :  { %3381 = vst [vmem:[#allocation11_spill] sm:$0xff] %v2985_v26 }
 0x127   :  { %v2989_v28 = vpop.f32.mrb[32].mxu0 }
 0x128   :  { %3382 = vst [vmem:[#allocation12_spill] sm:$0xff] %v2989_v28  ;;  %v2993_v30 = vpop.f32.mrb[33].mxu0  ;;  %v862_v28 = vpop.permute.xlu1 %861 }
 0x129   :  { %3383 = vst [vmem:[#allocation13_spill] sm:$0xff] %v2993_v30  ;;  %v2997_v32 = vpop.f32.mrb[34].mxu0  ;;  %v857_v30 = vpop.permute.xlu0 %856 }
 0x12a   :  { %3384 = vst [vmem:[#allocation14_spill] sm:$0xff] %v2997_v32  ;;  %v3001_v34 = vpop.f32.mrb[35].mxu0  ;;  %v3389_v32 = vmax.f32 %v2899_v47, %v2935_v0  ;;  %v3391_v0 = vmax.f32 %v2893_v44, %v2945_v6 }
 0x12b   :  { %3385 = vst [vmem:[#allocation15_spill] sm:$0xff] %v3001_v34 }
 0x12d   :  { %v867_v47 = vpop.permute.xlu0 %866 }
 0x12f   :  { %v2292_v36 = vpop.f32.mrb[36].mxu0 }
 0x130   :  { %v609_v37 = vpop.f32.mrb[37].mxu0 }
 0x131   :  { %v2293_v38 = vpop.f32.mrb[38].mxu0 }
 0x132   :  { %v612_v39 = vpop.f32.mrb[39].mxu0 }
 0x137   :  { %v3005_v40 = vpop.f32.mrb[40].mxu0 }
 0x138   :  { %v625_v41 = vpop.f32.mrb[41].mxu0 }
 0x139   :  { %v3007_v42 = vpop.f32.mrb[42].mxu0 }
 0x13a   :  { %v628_v43 = vpop.f32.mrb[43].mxu0 }
 0x13f   :  { %v3009_v59 = vpop.f32.mrb[44].mxu0 }
 0x140   :  { %v641_v31 = vpop.f32.mrb[45].mxu0 }
 0x141   :  { %v3011_v29 = vpop.f32.mrb[46].mxu0 }
 0x142   :  { %v3013_v33 = vpop.f32.mrb[47].mxu0 }
 0x147   :  { %v3015_v35 = vpop.f32.mrb[48].mxu0 }
 0x148   :  { %3386 = vst [vmem:[#allocation16_spill] sm:$0xff] %v3015_v35  ;;  %v3017_v23 = vpop.f32.mrb[49].mxu0 }
 0x149   :  { %v3019_v19 = vpop.f32.mrb[50].mxu0 }
 0x14a   :  { %3387 = vst [vmem:[#allocation17_spill] sm:$0xff] %v3019_v19  ;;  %v3021_v17 = vpop.f32.mrb[51].mxu0 }
 0x14f   :  { %v2308_v4 = vpop.f32.mrb[52].mxu0 }
 0x150   :  { %v770_v11 = vmax.f32 %v609_v37, %v2308_v4  ;;  %v3023_v9 = vpop.f32.mrb[53].mxu0 }
 0x151   :  { %3388 = vst [vmem:[#allocation18_spill] sm:$0xff] %v3023_v9  ;;  %v2309_v5 = vpop.f32.mrb[54].mxu0 }
 0x152   :  { %v788_v1 = vmax.f32 %v752_v62, %v770_v11  ;;  %v771_v34 = vmax.f32 %v612_v39, %v2309_v5  ;;  %v3028_v58 = vpop.f32.mrb[55].mxu0 }
 0x154   :  { %v789_v2 = vmax.f32 %v3389_v32, %v771_v34  ;;  %v914_v19 = vadd.f32 %v827_v27, %v788_v1 }
 0x156   :  { %v915_v56 = vadd.f32 %v832_v21, %v789_v2  ;;  %v932_v35 = vmax.f32 %v914_v19, 0.0  ;;  %v3392_v19 = vmax.f32 %v2907_v51, %v2949_v8 }
 0x157   :  { %v2312_v4 = vpop.f32.mrb[56].mxu0 }
 0x158   :  { %v774_v37 = vmax.f32 %v625_v41, %v2312_v4  ;;  %v689_v63 = vpop.f32.mrb[57].mxu0  ;;  %v933_v9 = vmax.f32 %v915_v56, 0.0  ;;  %v3396_v41 = vmax.f32 %v2901_v48, %v2961_v14 }
 0x159   :  { %v772_v26 = vmax.f32 %v2292_v36, %v689_v63  ;;  %v2313_v54 = vpop.f32.mrb[58].mxu0  ;;  %v872_v63 = vpop.permute.xlu1 %871 }
 0x15a   :  { %v792_v61 = vmax.f32 %v3390_v45, %v774_v37  ;;  %v775_v62 = vmax.f32 %v628_v43, %v2313_v54  ;;  %v692_v5 = vpop.f32.mrb[59].mxu0  ;;  %v986_v11 = vpack.c.bf16 %v933_v9, %v932_v35  ;;  %v877_v35 = vpop.permute.xlu0 %876 }
 0x15b   :  { %v790_v1 = vmax.f32 %v3391_v0, %v772_v26  ;;  %v773_v2 = vmax.f32 %v2293_v38, %v692_v5 }
 0x15c   :  { %v918_v21 = vadd.f32 %v847_v13, %v792_v61  ;;  %v793_v56 = vmax.f32 %v3392_v19, %v775_v62  ;;  %1429 = vmatpush1.bf16.msra.mxu1 %v986_v11 }
 0x15d   :  { %v916_v27 = vadd.f32 %v837_v25, %v790_v1  ;;  %v791_v54 = vmax.f32 %v3393_v49, %v773_v2  ;;  %1430 = vmatprep.subr.bf16.mxu1 %v3394_v3  ;;  %v3395_v25 = vmax.f32 %v2911_v53, %v2957_v12  ;;  %v3398_v53 = vmax.f32 %v2905_v50, %v2969_v18 }
 0x15e   :  { %v919_v9 = vadd.f32 %v852_v7, %v793_v56  ;;  %v936_v44 = vmax.f32 %v918_v21, 0.0  ;;  %v887_v62 = vpop.permute.xlu0 %886  ;;  %v3399_v50 = vmax.f32 %v2919_v57, %v2973_v20 }
 0x15f   :  { %v917_v32 = vadd.f32 %v842_v15, %v791_v54  ;;  %v2316_v34 = vpop.f32.mrb[60].mxu0  ;;  %v934_v36 = vmax.f32 %v916_v27, 0.0  ;;  %v882_v15 = vpop.permute.xlu1 %881  ;;  %v3401_v27 = vmax.f32 %v2926_v60, %v2981_v24  ;;  %v3402_v54 = vld [vmem:[#allocation6_spill] sm:$0xff] }
 0x160   :  { %v937_v6 = vmax.f32 %v919_v9, 0.0  ;;  %v778_v26 = vmax.f32 %v641_v31, %v2316_v34  ;;  %v705_v13 = vpop.f32.mrb[61].mxu0 }
 0x161   :  { %v935_v51 = vmax.f32 %v917_v32, 0.0  ;;  %v776_v8 = vmax.f32 %v3005_v40, %v705_v13  ;;  %v2317_v38 = vpop.f32.mrb[62].mxu0  ;;  %v3397_v40 = vmax.f32 %v2915_v55, %v2965_v16 }
 0x162   :  { %v796_v46 = vmax.f32 %v3395_v25, %v778_v26  ;;  %v779_v10 = vmax.f32 %v3013_v33, %v2317_v38  ;;  %v708_v39 = vpop.f32.mrb[63].mxu0  ;;  %v988_v7 = vpack.c.bf16 %v937_v6, %v936_v44  ;;  %v897_v57 = vpop.permute.xlu0 %896  ;;  %v3405_v26 = vld [vmem:[#allocation18_spill] sm:$0xff]  ;;  %v3407_v38 = vld [vmem:[#allocation9_spill] sm:$0xff]  ;;  %v3408_v25 = vld [vmem:[#allocation12_spill] sm:$0xff] }
 0x163   :  { %v794_v31 = vmax.f32 %v3396_v41, %v776_v8  ;;  %v777_v43 = vmax.f32 %v3007_v42, %v708_v39  ;;  %v987_v4 = vpack.c.bf16 %v935_v51, %v934_v36  ;;  %v892_v0 = vpop.permute.xlu1 %891  ;;  %v3406_v51 = vld [vmem:[#allocation16_spill] sm:$0xff] }
 0x164   :  { %v922_v37 = vadd.f32 %v867_v47, %v796_v46  ;;  %v797_v45 = vmax.f32 %v3397_v40, %v779_v10  ;;  %v3409_v46 = vmax.f32 %v3407_v38, %v3408_v25  ;;  %v3413_v40 = vld [vmem:[#allocation17_spill] sm:$0xff]  ;;  %v2444_v25 = vld [vmem:[%s3357_s3 + $0x104] ss:$8 sps:$4 sm:$0xff]  }
 0x165   :  { %v920_v61 = vadd.f32 %v857_v30, %v794_v31  ;;  %v795_v12 = vmax.f32 %v3398_v53, %v777_v43  ;;  %1431 = vmatpush1.bf16.msra.mxu1 %v987_v4  ;;  %v3410_v31 = vld [vmem:[#allocation7_spill] sm:$0xff]  ;;  %v3411_v43 = vld [vmem:[#allocation13_spill] sm:$0xff] }
 0x166   :  { %v923_v33 = vadd.f32 %v872_v63, %v797_v45  ;;  %1432 = vmatprep.subr.bf16.mxu1 %v3394_v3  ;;  %v940_v5 = vmax.f32 %v922_v37, 0.0  ;;  %v907_v41 = vpop.permute.xlu0 %906  ;;  %v3412_v4 = vmax.f32 %v3410_v31, %v3411_v43  ;;  %v2443_v38 = vld [vmem:[%s3357_s3 + $0xf0] ss:$8 sps:$4 sm:$0xff]  }
 0x167   :  { %v921_v48 = vadd.f32 %v862_v28, %v795_v12  ;;  %v2320_v14 = vpop.f32.mrb[64].mxu0  ;;  %v938_v55 = vmax.f32 %v920_v61, 0.0  ;;  %v3414_v12 = vld [vmem:[#allocation10_spill] sm:$0xff] }
 0x168   :  { %v941_v42 = vmax.f32 %v923_v33, 0.0  ;;  %v782_v11 = vmax.f32 %v3017_v23, %v2320_v14  ;;  %v721_v47 = vpop.f32.mrb[65].mxu0  ;;  %v3400_v23 = vmax.f32 %v2909_v52, %v2977_v22  ;;  %v902_v52 = vpop.permute.xlu1 %901  ;;  %v3415_v33 = vld [vmem:[#allocation14_spill] sm:$0xff] }
 0x169   :  { %v939_v16 = vmax.f32 %v921_v48, 0.0  ;;  %v780_v30 = vmax.f32 %v3009_v59, %v721_v47  ;;  %v2321_v1 = vpop.f32.mrb[66].mxu0  ;;  %1433 = vmatpush1.bf16.msra.mxu1 %v988_v7 }
 0x16a   :  { %v800_v18 = vmax.f32 %v3399_v50, %v782_v11  ;;  %v783_v2 = vmax.f32 %v3021_v17, %v2321_v1  ;;  %v724_v28 = vpop.f32.mrb[67].mxu0  ;;  %1434 = vmatprep.subr.bf16.mxu1 %v3394_v3  ;;  %v990_v21 = vpack.c.bf16 %v941_v42, %v940_v5  ;;  %v3403_v17 = vld [vmem:[#allocation11_spill] sm:$0xff] }
 0x16b   :  { %v798_v19 = vmax.f32 %v3400_v23, %v780_v30  ;;  %v781_v56 = vmax.f32 %v3011_v29, %v724_v28  ;;  %v989_v63 = vpack.c.bf16 %v939_v16, %v938_v55  ;;  %v3404_v9 = vmax.f32 %v3402_v54, %v3403_v17  ;;  %v3418_v42 = vld [vmem:[#allocation15_spill] sm:$0xff]  ;;  %v2417_v17 = vld [vmem:[%s3357_s3 + $0x74] ss:$8 sps:$4 sm:$0xff]  }
 0x16c   :  { %v926_v59 = vadd.f32 %v887_v62, %v800_v18  ;;  %v801_v49 = vmax.f32 %v3401_v27, %v783_v2  ;;  %v3416_v62 = vmax.f32 %v3414_v12, %v3415_v33  ;;  %v912_v14 = vpop.permute.xlu1 %911  ;;  %v2396_v28 = vld [vmem:[%s3357_s3] ss:$8 sps:$4 sm:$0xff]   ;;  %v2401_v23 = vld [vmem:[%s3357_s3 + $0x10] ss:$8 sps:$4 sm:$0xff]  }
 0x16d   :  { %v924_v20 = vadd.f32 %v877_v35, %v798_v19  ;;  %v799_v32 = vmax.f32 %v3404_v9, %v781_v56  ;;  %1435 = vmatpush1.bf16.msra.mxu1 %v989_v63  ;;  %v2404_v19 = vld [vmem:[%s3357_s3 + $0x20] ss:$8 sps:$4 sm:$0xff]   ;;  %v2405_v56 = vld [vmem:[%s3357_s3 + $0x34] ss:$8 sps:$4 sm:$0xff]   ;;  %v2407_v63 = vld [vmem:[%s3357_s3 + $0x30] ss:$8 sps:$4 sm:$0xff]  }
 0x16e   :  { %v927_v34 = vadd.f32 %v892_v0, %v801_v49  ;;  %1436 = vmatprep.subr.bf16.mxu1 %v3394_v3  ;;  %v944_v29 = vmax.f32 %v926_v59, 0.0  ;;  %v2408_v59 = vld [vmem:[%s3357_s3 + $0x44] ss:$8 sps:$4 sm:$0xff]   ;;  %v2410_v27 = vld [vmem:[%s3357_s3 + $0x40] ss:$8 sps:$4 sm:$0xff]  }
 0x16f   :  { %v925_v22 = vadd.f32 %v882_v15, %v799_v32  ;;  %v2324_v44 = vpop.f32.mrb[68].mxu0  ;;  %v942_v60 = vmax.f32 %v924_v20, 0.0  ;;  %v2411_v49 = vld [vmem:[%s3357_s3 + $0x54] ss:$8 sps:$4 sm:$0xff]   ;;  %v2414_v20 = vld [vmem:[%s3357_s3 + $0x64] ss:$8 sps:$4 sm:$0xff]  }
 0x170   :  { %v945_v6 = vmax.f32 %v927_v34, 0.0  ;;  %v786_v13 = vmax.f32 %v3405_v26, %v2324_v44  ;;  %v737_v36 = vpop.f32.mrb[69].mxu0  ;;  %v2416_v54 = vld [vmem:[%s3357_s3 + $0x60] ss:$8 sps:$4 sm:$0xff]   ;;  %v2419_v9 = vld [vmem:[%s3357_s3 + $0x70] ss:$8 sps:$4 sm:$0xff]  }
 0x171   :  { %v943_v24 = vmax.f32 %v925_v22, 0.0  ;;  %v784_v35 = vmax.f32 %v3406_v51, %v737_v36  ;;  %v2325_v8 = vpop.f32.mrb[70].mxu0  ;;  %1437 = vmatpush1.bf16.msra.mxu1 %v990_v21  ;;  %v2399_v21 = vld [vmem:[%s3357_s3 + $0x14] ss:$8 sps:$4 sm:$0xff]   ;;  %v2420_v32 = vld [vmem:[%s3357_s3 + $0x84] ss:$8 sps:$4 sm:$0xff]  }
 0x172   :  { %v804_v10 = vmax.f32 %v3409_v46, %v786_v13  ;;  %v787_v39 = vmax.f32 %v3028_v58, %v2325_v8  ;;  %v740_v7 = vpop.f32.mrb[71].mxu0  ;;  %1438 = vmatprep.subr.bf16.mxu1 %v3394_v3  ;;  %v992_v15 = vpack.c.bf16 %v945_v6, %v944_v29  ;;  %v3417_v58 = vld [vmem:[#allocation8_spill] sm:$0xff]  ;;  %v2422_v34 = vld [vmem:[%s3357_s3 + $0x80] ss:$8 sps:$4 sm:$0xff]   ;;  %v2426_v44 = vld [vmem:[%s3357_s3 + $0xa4] ss:$8 sps:$4 sm:$0xff]  }
 0x173   :  { %v802_v37 = vmax.f32 %v3412_v4, %v784_v35  ;;  %v785_v45 = vmax.f32 %v3413_v40, %v740_v7  ;;  %v991_v61 = vpack.c.bf16 %v943_v24, %v942_v60  ;;  %v3419_v11 = vmax.f32 %v3417_v58, %v3418_v42  ;;  %v2425_v22 = vld [vmem:[%s3357_s3 + $0x90] ss:$8 sps:$4 sm:$0xff]   ;;  %v2428_v29 = vld [vmem:[%s3357_s3 + $0xa0] ss:$8 sps:$4 sm:$0xff]   ;;  %v2429_v6 = vld [vmem:[%s3357_s3 + $0xb4] ss:$8 sps:$4 sm:$0xff]   ;;  %v3222_v7 = vpop.permute.xlu0 %1113 }
 0x174   :  { %v930_v53 = vadd.f32 %v907_v41, %v804_v10  ;;  %v805_v48 = vmax.f32 %v3416_v62, %v787_v39  ;;  %v2431_v26 = vld [vmem:[%s3357_s3 + $0xb0] ss:$8 sps:$4 sm:$0xff]   ;;  %v2432_v13 = vld [vmem:[%s3357_s3 + $0xc4] ss:$8 sps:$4 sm:$0xff]   ;;  %v2434_v36 = vld [vmem:[%s3357_s3 + $0xc0] ss:$8 sps:$4 sm:$0xff]  }
 0x175   :  { %v928_v5 = vadd.f32 %v897_v57, %v802_v37  ;;  %v803_v47 = vmax.f32 %v3419_v11, %v785_v45  ;;  %1439 = vmatpush1.bf16.msra.mxu1 %v991_v61  ;;  %v2413_v57 = vld [vmem:[%s3357_s3 + $0x50] ss:$8 sps:$4 sm:$0xff]   ;;  %v2435_v60 = vld [vmem:[%s3357_s3 + $0xd4] ss:$8 sps:$4 sm:$0xff]   ;;  %v2438_v51 = vld [vmem:[%s3357_s3 + $0xe4] ss:$8 sps:$4 sm:$0xff]  }
 0x176   :  { %v931_v0 = vadd.f32 %v912_v14, %v805_v48  ;;  %1440 = vmatprep.subr.bf16.mxu1 %v3394_v3  ;;  %v948_v16 = vmax.f32 %v930_v53, 0.0  ;;  %v2437_v24 = vld [vmem:[%s3357_s3 + $0xd0] ss:$8 sps:$4 sm:$0xff]   ;;  %v2440_v35 = vld [vmem:[%s3357_s3 + $0xe0] ss:$8 sps:$4 sm:$0xff]  }
 0x177   :  { %v929_v55 = vadd.f32 %v902_v52, %v803_v47  ;;  %v946_v1 = vmax.f32 %v928_v5, 0.0  ;;  %v2423_v52 = vld [vmem:[%s3357_s3 + $0x94] ss:$8 sps:$4 sm:$0xff]   ;;  %v2446_v46 = vld [vmem:[%s3357_s3 + $0x100] ss:$8 sps:$4 sm:$0xff]   ;;  %v1034_v41 = vpop.permute.xlu0 %1033 }
 0x178   :  { %v949_v30 = vmax.f32 %v931_v0, 0.0  ;;  %v2441_v8 = vld [vmem:[%s3357_s3 + $0xf4] ss:$8 sps:$4 sm:$0xff]   ;;  %v2449_v39 = vld [vmem:[%s3357_s3 + $0x110] ss:$8 sps:$4 sm:$0xff]  }
 0x179   :  { %v947_v50 = vmax.f32 %v929_v55, 0.0  ;;  %1441 = vmatpush1.bf16.msra.mxu1 %v992_v15  ;;  %v2447_v10 = vld [vmem:[%s3357_s3 + $0x114] ss:$8 sps:$4 sm:$0xff]   ;;  %v3224_v15 = vpop.permute.xlu1 %1118  ;;  %v2452_v58 = vld [vmem:[%s3359_s5 + $0x4] ss:$12 sps:$4 sm:$0xff]  }
 0x17a   :  { %1442 = vmatprep.subr.bf16.mxu1 %v3394_v3  ;;  %v994_v18 = vpack.c.bf16 %v949_v30, %v948_v16  ;;  %1828 = vmatprep.mubr.bf16.mxu0 %v2452_v58 }
 0x17b   :  { %v993_v2 = vpack.c.bf16 %v947_v50, %v946_v1  ;;  %v3226_v43 = vpop.permute.xlu0 %1123 }
 0x17d   :  { %1443 = vmatpush1.bf16.msra.mxu1 %v993_v2  ;;  %v1039_v31 = vpop.permute.xlu1 %1038 }
 0x17e   :  { %1444 = vmatprep.subr.bf16.mxu1 %v3394_v3  ;;  %v2402_v3 = vld [vmem:[%s3357_s3 + $0x24] ss:$8 sps:$4 sm:$0xff]   ;;  %s2470_s3 = scalar_lea.vmem %s2001_s14, 32 }
 0x17f   :  { %v1044_v37 = vpop.permute.xlu0 %1043  ;;  %p2472_p2 = scmp.lt.s32.totalorder %s2470_s3, %s2466_s15 }
 0x181   :  { %1445 = vmatpush1.bf16.msra.mxu1 %v994_v18  ;;  %v3228_v4 = vpop.permute.xlu1 %1128  ;;  %p2473_p3 = por %p2472_p2, %p2471_p1 }
 0x183   :  { %v3230_v45 = vpop.permute.xlu0 %1133  ;;  %p2474_p4 = pnand %p2473_p3, %p2467_p0 }
 0x184   :  { %1461 = vmatmul.mubr.bf16.vlgmr.msra.gmra.mrb[0].mxu1 %v2396_v28 }
 0x185   :  { %2121 = vmatprep.mubr.msk.bf16.mxu1 %vm1373_vm2, %v2399_v21  ;;  %v1049_v40 = vpop.permute.xlu1 %1048 }
 0x187   :  { %v1054_v53 = vpop.permute.xlu0 %1053 }
 0x189   :  { %v3232_v61 = vpop.permute.xlu1 %1138 }
 0x18b   :  { %v3234_v14 = vpop.permute.xlu0 %1143 }
 0x18c   :  { %1469 = vmatmul.mubr.bf16.gmra.mrb[4].mxu1 %v2401_v23 }
 0x18d   :  { %2122 = vmatprep.mubr.msk.bf16.mxu1 %vm1373_vm2, %v2402_v3  ;;  %v1059_v12 = vpop.permute.xlu1 %1058 }
 0x18f   :  { %v1064_v30 = vpop.permute.xlu0 %1063 }
 0x191   :  { %v3239_v47 = vpop.permute.xlu1 %1148 }
 0x194   :  { %1477 = vmatmul.mubr.bf16.gmra.mrb[8].mxu1 %v2404_v19 }
 0x195   :  { %2123 = vmatprep.mubr.msk.bf16.mxu1 %vm1373_vm2, %v2405_v56  ;;  %v1069_v2 = vpop.permute.xlu1 %1068  ;;  %v3243_v56 = vpop.permute.xlu0 %1153 }
 0x19c   :  { %1485 = vmatmul.mubr.bf16.gmra.mrb[12].mxu1 %v2407_v63 }
 0x19d   :  { %2124 = vmatprep.mubr.msk.bf16.mxu1 %vm1373_vm2, %v2408_v59  ;;  %v3247_v59 = vpop.permute.xlu1 %1158 }
 0x1a4   :  { %1493 = vmatmul.mubr.bf16.gmra.mrb[16].mxu1 %v2410_v27 }
 0x1a5   :  { %2125 = vmatprep.mubr.msk.bf16.mxu1 %vm1373_vm2, %v2411_v49 }
 0x1ac   :  { %1501 = vmatmul.mubr.bf16.gmra.mrb[20].mxu1 %v2413_v57 }
 0x1ad   :  { %2126 = vmatprep.mubr.msk.bf16.mxu1 %vm1373_vm2, %v2414_v20 }
 0x1b4   :  { %1509 = vmatmul.mubr.bf16.gmra.mrb[24].mxu1 %v2416_v54  ;;  %v2458_v54 = vld [vmem:[%s3359_s5 + $0x8] ss:$12 sps:$4 sm:$0xff]  }
 0x1b5   :  { %2127 = vmatprep.mubr.msk.bf16.mxu1 %vm1373_vm2, %v2417_v17 }
 0x1bc   :  { %1517 = vmatmul.mubr.bf16.gmra.mrb[28].mxu1 %v2419_v9 }
 0x1bd   :  { %2128 = vmatprep.mubr.msk.bf16.mxu1 %vm1373_vm2, %v2420_v32  ;;  %v1074_v32 = vpop.permute.xlu0 %1073 }
 0x1c4   :  { %1525 = vmatmul.mubr.bf16.gmra.mrb[32].mxu1 %v2422_v34 }
 0x1c5   :  { %2129 = vmatprep.mubr.msk.bf16.mxu1 %vm1373_vm2, %v2423_v52 }
 0x1cc   :  { %1533 = vmatmul.mubr.bf16.gmra.mrb[36].mxu1 %v2425_v22  ;;  %v1079_v22 = vpop.permute.xlu1 %1078 }
 0x1cd   :  { %2130 = vmatprep.mubr.msk.bf16.mxu1 %vm1373_vm2, %v2426_v44 }
 0x1d4   :  { %1541 = vmatmul.mubr.bf16.gmra.mrb[40].mxu1 %v2428_v29 }
 0x1d5   :  { %2131 = vmatprep.mubr.msk.bf16.mxu1 %vm1373_vm2, %v2429_v6 }
 0x1dc   :  { %1549 = vmatmul.mubr.bf16.gmra.mrb[44].mxu1 %v2431_v26 }
 0x1dd   :  { %2132 = vmatprep.mubr.msk.bf16.mxu1 %vm1373_vm2, %v2432_v13  ;;  %v3255_v13 = vpop.permute.xlu0 %1163 }
 0x1e4   :  { %1557 = vmatmul.mubr.bf16.gmra.mrb[48].mxu1 %v2434_v36 }
 0x1e5   :  { %2133 = vmatprep.mubr.msk.bf16.mxu1 %vm1373_vm2, %v2435_v60 }
 0x1ec   :  { %1565 = vmatmul.mubr.bf16.gmra.mrb[52].mxu1 %v2437_v24 }
 0x1ed   :  { %2134 = vmatprep.mubr.msk.bf16.mxu1 %vm1373_vm2, %v2438_v51  ;;  %v3257_v51 = vpop.permute.xlu1 %1168 }
 0x1f4   :  { %1573 = vmatmul.mubr.bf16.gmra.mrb[56].mxu1 %v2440_v35 }
 0x1f5   :  { %2135 = vmatprep.mubr.msk.bf16.mxu1 %vm1373_vm2, %v2441_v8 }
 0x1fc   :  { %1581 = vmatmul.mubr.bf16.gmra.mrb[60].mxu1 %v2443_v38 }
 0x1fd   :  { %2136 = vmatprep.mubr.msk.bf16.mxu1 %vm1373_vm2, %v2444_v25  ;;  %v1084_v25 = vpop.permute.xlu0 %1083 }
 0x204   :  { %1589 = vmatmul.mubr.bf16.gmra.mrb[64].mxu1 %v2446_v46 }
 0x205   :  { %2137 = vmatprep.mubr.msk.bf16.mxu1 %vm1373_vm2, %v2447_v10 }
 0x20c   :  { %1597 = vmatmul.mubr.bf16.gmra.mrb[68].mxu1 %v2449_v39 }
 0x20d   :  { %2330 = vmatprep.mubr.msk.bf16.mxu1 %vm1783_vm3, %v2458_v54 }
 0x257   :  { %v1462_v33 = vpop.f32.mrb[0].mxu1 }
 0x258   :  { %v1463_v62 = vadd.f32 %v1462_v33, %v1034_v41  ;;  %v1464_v48 = vpop.f32.mrb[1].mxu1  ;;  %v1089_v41 = vpop.permute.xlu1 %1088 }
 0x259   :  { %v1465_v5 = vpop.f32.mrb[2].mxu1  ;;  %v3261_v33 = vpop.permute.xlu0 %1173 }
 0x25a   :  { %v1466_v42 = vadd.f32 %v1465_v5, %v1039_v31  ;;  %v1467_v11 = vpop.f32.mrb[3].mxu1  ;;  %v1605_v0 = vmax.f32 %v1463_v62, 0.0 }
 0x25c   :  { %v1606_v55 = vmax.f32 %v1466_v42, 0.0  ;;  %v3265_v48 = vpop.permute.xlu1 %1178 }
 0x25e   :  { %v3241_v16 = vpack.c.bf16 %v1606_v55, %v1605_v0 }
 0x25f   :  { %v1470_v1 = vpop.f32.mrb[4].mxu1 }
 0x260   :  { %v1471_v50 = vadd.f32 %v1470_v1, %v1044_v37  ;;  %v1472_v18 = vpop.f32.mrb[5].mxu1 }
 0x261   :  { %v1473_v28 = vpop.f32.mrb[6].mxu1  ;;  %v1099_v18 = vpop.permute.xlu1 %1098 }
 0x262   :  { %v1474_v21 = vadd.f32 %v1473_v28, %v1049_v40  ;;  %v1475_v23 = vpop.f32.mrb[7].mxu1  ;;  %v1607_v3 = vmax.f32 %v1471_v50, 0.0 }
 0x264   :  { %v1608_v19 = vmax.f32 %v1474_v21, 0.0 }
 0x266   :  { %v3245_v63 = vpack.c.bf16 %v1608_v19, %v1607_v3 }
 0x267   :  { %v1478_v27 = vpop.f32.mrb[8].mxu1 }
 0x268   :  { %v1479_v49 = vadd.f32 %v1478_v27, %v1054_v53  ;;  %v1480_v57 = vpop.f32.mrb[9].mxu1 }
 0x269   :  { %v1481_v20 = vpop.f32.mrb[10].mxu1  ;;  %v3271_v57 = vpop.permute.xlu1 %1188 }
 0x26a   :  { %v1482_v17 = vadd.f32 %v1481_v20, %v1059_v12  ;;  %v1483_v9 = vpop.f32.mrb[11].mxu1  ;;  %v1609_v34 = vmax.f32 %v1479_v49, 0.0 }
 0x26c   :  { %v1610_v52 = vmax.f32 %v1482_v17, 0.0 }
 0x26e   :  { %v3253_v44 = vpack.c.bf16 %v1610_v52, %v1609_v34 }
 0x26f   :  { %v1486_v29 = vpop.f32.mrb[12].mxu1 }
 0x270   :  { %v1487_v6 = vadd.f32 %v1486_v29, %v1064_v30  ;;  %v1488_v26 = vpop.f32.mrb[13].mxu1  ;;  %v1094_v30 = vpop.permute.xlu0 %1093 }
 0x271   :  { %v1489_v36 = vpop.f32.mrb[14].mxu1 }
 0x272   :  { %v1490_v60 = vadd.f32 %v1489_v36, %v1069_v2  ;;  %v1491_v24 = vpop.f32.mrb[15].mxu1  ;;  %v1611_v35 = vmax.f32 %v1487_v6, 0.0 }
 0x274   :  { %v1612_v8 = vmax.f32 %v1490_v60, 0.0  ;;  %v3269_v3 = vpop.permute.xlu0 %1183 }
 0x276   :  { %v3259_v38 = vpack.c.bf16 %v1612_v8, %v1611_v35 }
 0x277   :  { %v1494_v46 = vpop.f32.mrb[16].mxu1 }
 0x278   :  { %v1495_v10 = vadd.f32 %v1494_v46, %v1074_v32  ;;  %v1496_v39 = vpop.f32.mrb[17].mxu1  ;;  %v1104_v9 = vpop.permute.xlu0 %1103 }
 0x279   :  { %v1497_v31 = vpop.f32.mrb[18].mxu1 }
 0x27a   :  { %v1498_v37 = vadd.f32 %v1497_v31, %v1079_v22  ;;  %v1499_v40 = vpop.f32.mrb[19].mxu1  ;;  %v1613_v53 = vmax.f32 %v1495_v10, 0.0  ;;  %v1109_v22 = vpop.permute.xlu1 %1108 }
 0x27c   :  { %v1614_v12 = vmax.f32 %v1498_v37, 0.0 }
 0x27e   :  { %v3263_v62 = vpack.c.bf16 %v1614_v12, %v1613_v53 }
 0x27f   :  { %v1502_v5 = vpop.f32.mrb[20].mxu1 }
 0x280   :  { %v1503_v58 = vadd.f32 %v1502_v5, %v1084_v25  ;;  %v1504_v42 = vpop.f32.mrb[21].mxu1 }
 0x281   :  { %v1505_v11 = vpop.f32.mrb[22].mxu1 }
 0x282   :  { %v1506_v0 = vadd.f32 %v1505_v11, %v1089_v41  ;;  %v1507_v55 = vpop.f32.mrb[23].mxu1  ;;  %v1615_v1 = vmax.f32 %v1503_v58, 0.0 }
 0x284   :  { %v1616_v50 = vmax.f32 %v1506_v0, 0.0 }
 0x286   :  { %v3267_v2 = vpack.c.bf16 %v1616_v50, %v1615_v1 }
 0x287   :  { %v1510_v28 = vpop.f32.mrb[24].mxu1 }
 0x288   :  { %v1511_v21 = vadd.f32 %v1510_v28, %v1094_v30  ;;  %v1512_v23 = vpop.f32.mrb[25].mxu1 }
 0x289   :  { %v1513_v19 = vpop.f32.mrb[26].mxu1 }
 0x28a   :  { %v1514_v27 = vadd.f32 %v1513_v19, %v1099_v18  ;;  %v1515_v49 = vpop.f32.mrb[27].mxu1  ;;  %v1617_v20 = vmax.f32 %v1511_v21, 0.0 }
 0x28c   :  { %v1618_v54 = vmax.f32 %v1514_v27, 0.0 }
 0x28e   :  { %v3273_v17 = vpack.c.bf16 %v1618_v54, %v1617_v20 }
 0x28f   :  { %v1518_v32 = vpop.f32.mrb[28].mxu1 }
 0x290   :  { %v1519_v34 = vadd.f32 %v1518_v32, %v1104_v9  ;;  %v1520_v52 = vpop.f32.mrb[29].mxu1 }
 0x291   :  { %v1521_v29 = vpop.f32.mrb[30].mxu1 }
 0x292   :  { %v1522_v6 = vadd.f32 %v1521_v29, %v1109_v22  ;;  %v1523_v26 = vpop.f32.mrb[31].mxu1  ;;  %v1619_v36 = vmax.f32 %v1519_v34, 0.0 }
 0x294   :  { %v1620_v60 = vmax.f32 %v1522_v6, 0.0 }
 0x296   :  { %v3275_v24 = vpack.c.bf16 %v1620_v60, %v1619_v36 }
 0x297   :  { %v1526_v35 = vpop.f32.mrb[32].mxu1 }
 0x298   :  { %v1527_v8 = vadd.f32 %v1526_v35, %v3222_v7  ;;  %v1528_v25 = vpop.f32.mrb[33].mxu1 }
 0x299   :  { %v1529_v46 = vpop.f32.mrb[34].mxu1 }
 0x29a   :  { %v1530_v10 = vadd.f32 %v1529_v46, %v3224_v15  ;;  %v1531_v39 = vpop.f32.mrb[35].mxu1  ;;  %v1621_v41 = vmax.f32 %v1527_v8, 0.0 }
 0x29c   :  { %v1622_v31 = vmax.f32 %v1530_v10, 0.0 }
 0x29e   :  { %v1665_v37 = vpack.c.bf16 %v1622_v31, %v1621_v41 }
 0x29f   :  { %v1534_v40 = vpop.f32.mrb[36].mxu1 }
 0x2a0   :  { %v1535_v53 = vadd.f32 %v1534_v40, %v3226_v43  ;;  %v1536_v12 = vpop.f32.mrb[37].mxu1  ;;  %2195 = vmatprep.subr.bf16.mxu0 %v1665_v37 }
 0x2a1   :  { %v1537_v5 = vpop.f32.mrb[38].mxu1  ;;  %2196 = vmatpush3.bf16.msra.mxu0 %v3241_v16 }
 0x2a2   :  { %v1538_v58 = vadd.f32 %v1537_v5, %v3228_v4  ;;  %v1539_v42 = vpop.f32.mrb[39].mxu1  ;;  %v1623_v7 = vmax.f32 %v1535_v53, 0.0 }
 0x2a4   :  { %v1624_v11 = vmax.f32 %v1538_v58, 0.0  ;;  %v1194_v58 = vpop.permute.xlu0 %1193 }
 0x2a6   :  { %v1666_v0 = vpack.c.bf16 %v1624_v11, %v1623_v7  ;;  %v1199_v11 = vpop.permute.xlu1 %1198 }
 0x2a7   :  { %v1542_v55 = vpop.f32.mrb[40].mxu1 }
 0x2a8   :  { %v1543_v15 = vadd.f32 %v1542_v55, %v3230_v45  ;;  %v1544_v30 = vpop.f32.mrb[41].mxu1  ;;  %2197 = vmatprep.subr.bf16.mxu0 %v1666_v0 }
 0x2a9   :  { %v1545_v1 = vpop.f32.mrb[42].mxu1  ;;  %2198 = vmatpush3.bf16.msra.mxu0 %v3245_v63 }
 0x2aa   :  { %v1546_v43 = vadd.f32 %v1545_v1, %v3232_v61  ;;  %v1547_v50 = vpop.f32.mrb[43].mxu1  ;;  %v1625_v18 = vmax.f32 %v1543_v15, 0.0 }
 0x2ac   :  { %v1626_v28 = vmax.f32 %v1546_v43, 0.0  ;;  %v1204_v43 = vpop.permute.xlu0 %1203 }
 0x2ae   :  { %v1667_v16 = vpack.c.bf16 %v1626_v28, %v1625_v18 }
 0x2af   :  { %v1550_v21 = vpop.f32.mrb[44].mxu1 }
 0x2b0   :  { %v1551_v4 = vadd.f32 %v1550_v21, %v3234_v14  ;;  %v1552_v23 = vpop.f32.mrb[45].mxu1  ;;  %2199 = vmatprep.subr.bf16.mxu0 %v1667_v16  ;;  %v1209_v16 = vpop.permute.xlu1 %1208 }
 0x2b1   :  { %v1553_v19 = vpop.f32.mrb[46].mxu1  ;;  %2200 = vmatpush3.bf16.msra.mxu0 %v3253_v44 }
 0x2b2   :  { %v1554_v45 = vadd.f32 %v1553_v19, %v3239_v47  ;;  %v1555_v27 = vpop.f32.mrb[47].mxu1  ;;  %v1627_v49 = vmax.f32 %v1551_v4, 0.0  ;;  %v2456_v4 = vld [vmem:[%s3359_s5 + $0x34] ss:$12 sps:$4 sm:$0xff]  }
 0x2b4   :  { %v1628_v20 = vmax.f32 %v1554_v45, 0.0 }
 0x2b6   :  { %v1668_v63 = vpack.c.bf16 %v1628_v20, %v1627_v49  ;;  %v2459_v20 = vld [vmem:[%s3359_s5 + $0x30] ss:$12 sps:$4 sm:$0xff]  }
 0x2b7   :  { %v1558_v54 = vpop.f32.mrb[48].mxu1 }
 0x2b8   :  { %v1559_v61 = vadd.f32 %v1558_v54, %v3243_v56  ;;  %v1560_v9 = vpop.f32.mrb[49].mxu1  ;;  %2201 = vmatprep.subr.bf16.mxu0 %v1668_v63  ;;  %v2460_v63 = vld [vmem:[%s3359_s5 + $0x20] ss:$12 sps:$4 sm:$0xff]  }
 0x2b9   :  { %v1561_v32 = vpop.f32.mrb[50].mxu1  ;;  %2202 = vmatpush3.bf16.msra.mxu0 %v3259_v38  ;;  %v2461_v54 = vld [vmem:[%s3359_s5 + $0x4c] ss:$12 sps:$4 sm:$0xff]   ;;  %v2464_v9 = vld [vmem:[%s3359_s5 + $0x48] ss:$12 sps:$4 sm:$0xff]  }
 0x2ba   :  { %v1562_v14 = vadd.f32 %v1561_v32, %v3247_v59  ;;  %v1563_v34 = vpop.f32.mrb[51].mxu1  ;;  %v1629_v52 = vmax.f32 %v1559_v61, 0.0  ;;  %v2463_v61 = vld [vmem:[%s3359_s5 + $0x38] ss:$12 sps:$4 sm:$0xff]   ;;  %v2465_v32 = vld [vmem:[%s3359_s5 + $0x50] ss:$12 sps:$4 sm:$0xff]  }
 0x2bc   :  { %v1630_v22 = vmax.f32 %v1562_v14, 0.0  ;;  %v2491_v14 = vmov 0.0  }
 0x2be   :  { %v1669_v44 = vpack.c.bf16 %v1630_v22, %v1629_v52 }
 0x2bf   :  { %v1566_v29 = vpop.f32.mrb[52].mxu1 }
 0x2c0   :  { %v1567_v47 = vadd.f32 %v1566_v29, %v3255_v13  ;;  %v1568_v6 = vpop.f32.mrb[53].mxu1  ;;  %2203 = vmatprep.subr.bf16.mxu0 %v1669_v44  ;;  %v1686_v29 = vpop.permute.xlu0 %1685 }
 0x2c1   :  { %v1569_v26 = vpop.f32.mrb[54].mxu1  ;;  %2204 = vmatpush3.bf16.msra.mxu0 %v3263_v62 }
 0x2c2   :  { %v1570_v56 = vadd.f32 %v1569_v26, %v3257_v51  ;;  %v1571_v36 = vpop.f32.mrb[55].mxu1  ;;  %v1631_v60 = vmax.f32 %v1567_v47, 0.0  ;;  %v1691_v26 = vpop.permute.xlu1 %1690 }
 0x2c4   :  { %v1632_v35 = vmax.f32 %v1570_v56, 0.0  ;;  %v1696_v36 = vpop.permute.xlu0 %1695 }
 0x2c6   :  { %v1670_v38 = vpack.c.bf16 %v1632_v35, %v1631_v60 }
 0x2c7   :  { %v1574_v8 = vpop.f32.mrb[56].mxu1 }
 0x2c8   :  { %v1575_v59 = vadd.f32 %v1574_v8, %v3261_v33  ;;  %v1576_v25 = vpop.f32.mrb[57].mxu1  ;;  %2205 = vmatprep.subr.bf16.mxu0 %v1670_v38 }
 0x2c9   :  { %v1577_v46 = vpop.f32.mrb[58].mxu1  ;;  %2206 = vmatpush3.bf16.msra.mxu0 %v3267_v2  ;;  %v1706_v25 = vpop.permute.xlu0 %1705 }
 0x2ca   :  { %v1578_v13 = vadd.f32 %v1577_v46, %v3265_v48  ;;  %v1579_v10 = vpop.f32.mrb[59].mxu1  ;;  %v1633_v39 = vmax.f32 %v1575_v59, 0.0  ;;  %v1701_v46 = vpop.permute.xlu1 %1700 }
 0x2cc   :  { %v1634_v41 = vmax.f32 %v1578_v13, 0.0 }
 0x2ce   :  { %v1671_v62 = vpack.c.bf16 %v1634_v41, %v1633_v39 }
 0x2cf   :  { %v1582_v31 = vpop.f32.mrb[60].mxu1 }
 0x2d0   :  { %v1583_v51 = vadd.f32 %v1582_v31, %v3269_v3  ;;  %v1584_v37 = vpop.f32.mrb[61].mxu1  ;;  %2207 = vmatprep.subr.bf16.mxu0 %v1671_v62  ;;  %v2450_v3 = vld [vmem:[%s3359_s5] ss:$12 sps:$4 sm:$0xff]  }
 0x2d1   :  { %v1585_v40 = vpop.f32.mrb[62].mxu1  ;;  %2208 = vmatpush3.bf16.msra.mxu0 %v3273_v17 }
 0x2d2   :  { %v1586_v33 = vadd.f32 %v1585_v40, %v3271_v57  ;;  %v1587_v53 = vpop.f32.mrb[63].mxu1  ;;  %v1635_v12 = vmax.f32 %v1583_v51, 0.0  ;;  %v2453_v57 = vld [vmem:[%s3359_s5 + $0x1c] ss:$12 sps:$4 sm:$0xff]  }
 0x2d4   :  { %v1636_v5 = vmax.f32 %v1586_v33, 0.0 }
 0x2d6   :  { %v1672_v2 = vpack.c.bf16 %v1636_v5, %v1635_v12 }
 0x2d7   :  { %v1590_v48 = vpop.f32.mrb[64].mxu1 }
 0x2d8   :  { %v1591_v42 = vadd.f32 %v1590_v48, %v1194_v58  ;;  %v1592_v7 = vpop.f32.mrb[65].mxu1  ;;  %2209 = vmatprep.subr.bf16.mxu0 %v1672_v2 }
 0x2d9   :  { %v1593_v0 = vpop.f32.mrb[66].mxu1  ;;  %2210 = vmatpush3.bf16.msra.mxu0 %v3275_v24  ;;  %v2455_v24 = vld [vmem:[%s3359_s5 + $0x18] ss:$12 sps:$4 sm:$0xff]  }
 0x2da   :  { %v1594_v17 = vadd.f32 %v1593_v0, %v1199_v11  ;;  %v1595_v55 = vpop.f32.mrb[67].mxu1  ;;  %v1637_v15 = vmax.f32 %v1591_v42, 0.0  ;;  %2338 = vmatprep.subr.bf16.mxu0 %v2491_v14 }
 0x2db   :  { %v1711_v55 = vpop.permute.xlu1 %1710 }
 0x2dc   :  { %v1638_v30 = vmax.f32 %v1594_v17, 0.0  ;;  %1829 = vmatmul.mubr.bf16.vlgmr.msra.gmra.mrb[72].mxu0 %v2450_v3  ;;  %v1716_v17 = vpop.permute.xlu0 %1715 }
 0x2dd   :  { %1836 = vmatprep.mubr.bf16.mxu0 %v2453_v57 }
 0x2de   :  { %v1673_v1 = vpack.c.bf16 %v1638_v30, %v1637_v15 }
 0x2df   :  { %v1598_v50 = vpop.f32.mrb[68].mxu1 }
 0x2e0   :  { %v1599_v18 = vadd.f32 %v1598_v50, %v1204_v43  ;;  %v1600_v28 = vpop.f32.mrb[69].mxu1  ;;  %2326 = vmatprep.subr.bf16.mxu1 %v1673_v1 }
 0x2e1   :  { %v1601_v21 = vpop.f32.mrb[70].mxu1  ;;  %2327 = vmatpush3.bf16.msra.mxu1 %v1673_v1 }
 0x2e2   :  { %v1602_v23 = vadd.f32 %v1601_v21, %v1209_v16  ;;  %v1603_v19 = vpop.f32.mrb[71].mxu1  ;;  %v1639_v45 = vmax.f32 %v1599_v18, 0.0 }
 0x2e4   :  { %v1640_v27 = vmax.f32 %v1602_v23, 0.0  ;;  %1837 = vmatmul.mubr.bf16.gmra.mrb[76].mxu0 %v2455_v24 }
 0x2e5   :  { %1844 = vmatprep.mubr.bf16.mxu0 %v2456_v4 }
 0x2e6   :  { %v1674_v49 = vpack.c.bf16 %v1640_v27, %v1639_v45 }
 0x2e8   :  { %2328 = vmatprep.subr.bf16.mxu1 %v1674_v49 }
 0x2e9   :  { %2329 = vmatpush3.bf16.msra.mxu1 %v1674_v49 }
 0x2ec   :  { %1845 = vmatmul.mubr.bf16.gmra.mrb[80].mxu0 %v2459_v20  ;;  %2331 = vmatmul.mubr.msk.bf16.vlgmr.msra.gmra.mrb[72].mxu1 %vm1783_vm3, %v2460_v63  ;;  %v1721_v63 = vpop.permute.xlu1 %1720 }
 0x2ed   :  { %1852 = vmatprep.mubr.bf16.mxu0 %v2461_v54  ;;  %2334 = vmatprep.mubr.msk.bf16.mxu1 %vm1783_vm3, %v2463_v61 }
 0x2f4   :  { %1853 = vmatmul.mubr.bf16.gmra.mrb[84].mxu0 %v2464_v9  ;;  %2335 = vmatmul.mubr.msk.bf16.gmra.mrb[76].mxu1 %vm1783_vm3, %v2465_v32 }
 0x2f5   :  { %2346 = vmatprep.mubr.msk.bf16.mxu0 %vm2492_vm4, %v2491_v14 }
 0x3af   :  { %v2211_v34 = vpop.f32.mrb[72].mxu0 }
 0x3b0   :  { %v2212_v52 = vpop.f32.mrb[73].mxu0 }
 0x3b1   :  { %v2213_v22 = vadd.f32 %v2212_v52, %v2211_v34  ;;  %v2214_v44 = vpop.f32.mrb[74].mxu0 }
 0x3b2   :  { %v2215_v47 = vpop.f32.mrb[75].mxu0 }
 0x3b3   :  { %v2216_v6 = vadd.f32 %v2215_v47, %v2214_v44  ;;  %v1831_v41 = vadd.f32 %v2213_v22, %v1686_v29  ;;  %v1934_v47 = vld [vmem:[%s3361_s7] sm:$0x1] }
 0x3b5   :  { %v1834_v5 = vadd.f32 %v2216_v6, %v1691_v26  ;;  %v1945_v6 = vlaneseq }
 0x3b7   :  { %v2217_v56 = vpop.f32.mrb[76].mxu0  ;;  %v1946_v26 = vshrl.u32 %v1945_v6, 7 }
 0x3b8   :  { %v2218_v60 = vpop.f32.mrb[77].mxu0 }
 0x3b9   :  { %v2219_v35 = vadd.f32 %v2218_v60, %v2217_v56  ;;  %v2220_v38 = vpop.f32.mrb[78].mxu0  ;;  %v1947_v56 = vsub.s32 0, %v1946_v26 }
 0x3ba   :  { %v2221_v8 = vpop.f32.mrb[79].mxu0 }
 0x3bb   :  { %v2222_v59 = vadd.f32 %v2221_v8, %v2220_v38  ;;  %v1839_v13 = vadd.f32 %v2219_v35, %v1696_v36  ;;  %v1943_v36 = vpop.permute.xlu0 %1942 }
 0x3bc   :  { %v1948_v60 = vrot.slane %v1943_v36, %v1947_v56 }
 0x3bd   :  { %v1842_v37 = vadd.f32 %v2222_v59, %v1701_v46 }
 0x3bf   :  { %v2223_v10 = vpop.f32.mrb[80].mxu0  ;;  %v2332_v39 = vpop.f32.mrb[72].mxu1 }
 0x3c0   :  { %v1904_v62 = vadd.f32 %v2332_v39, %v1839_v13  ;;  %v2224_v31 = vpop.f32.mrb[81].mxu0  ;;  %v1895_v51 = vpop.f32.mrb[73].mxu1 }
 0x3c1   :  { %v2225_v40 = vadd.f32 %v2224_v31, %v2223_v10  ;;  %v1896_v33 = vadd.f32 %v1895_v51, %v1831_v41  ;;  %v2226_v53 = vpop.f32.mrb[82].mxu0  ;;  %v2333_v12 = vpop.f32.mrb[74].mxu1 }
 0x3c2   :  { %v1907_v2 = vadd.f32 %v2333_v12, %v1842_v37  ;;  %v2227_v58 = vpop.f32.mrb[83].mxu0  ;;  %v1898_v48 = vpop.f32.mrb[75].mxu1  ;;  %v1928_v3 = vmax.f32 %v1904_v62, 0.0 }
 0x3c3   :  { %v2228_v42 = vadd.f32 %v2227_v58, %v2226_v53  ;;  %v1899_v7 = vadd.f32 %v1898_v48, %v1834_v5  ;;  %v1926_v0 = vmax.f32 %v1896_v33, 0.0  ;;  %v1847_v50 = vadd.f32 %v2225_v40, %v1706_v25 }
 0x3c4   :  { %v1929_v11 = vmax.f32 %v1907_v2, 0.0 }
 0x3c5   :  { %v1927_v57 = vmax.f32 %v1899_v7, 0.0  ;;  %v1850_v23 = vadd.f32 %v2228_v42, %v1711_v55 }
 0x3c6   :  { %v1936_v15 = vpack.c.bf16 %v1929_v11, %v1928_v3 }
 0x3c7   :  { %v1935_v30 = vpack.c.bf16 %v1927_v57, %v1926_v0  ;;  %v2229_v1 = vpop.f32.mrb[84].mxu0  ;;  %v2336_v43 = vpop.f32.mrb[76].mxu1 }
 0x3c8   :  { %v2230_v18 = vpop.f32.mrb[85].mxu0  ;;  %v1911_v28 = vpop.f32.mrb[77].mxu1 }
 0x3c9   :  { %v2231_v24 = vadd.f32 %v2230_v18, %v2229_v1  ;;  %v1912_v16 = vadd.f32 %v1911_v28, %v1847_v50  ;;  %v2232_v21 = vpop.f32.mrb[86].mxu0  ;;  %v2337_v4 = vpop.f32.mrb[78].mxu1  ;;  %2339 = vmatpush3.bf16.msra.mxu0 %v1935_v30 }
 0x3ca   :  { %v2233_v19 = vpop.f32.mrb[87].mxu0  ;;  %v1914_v45 = vpop.f32.mrb[79].mxu1  ;;  %2340 = vmatprep.subr.bf16.mxu0 %v2491_v14 }
 0x3cb   :  { %v1855_v27 = vadd.f32 %v2231_v24, %v1716_v17  ;;  %v2234_v49 = vadd.f32 %v2233_v19, %v2232_v21  ;;  %v1915_v20 = vadd.f32 %v1914_v45, %v1850_v23  ;;  %v1930_v61 = vmax.f32 %v1912_v16, 0.0 }
 0x3cd   :  { %v1920_v54 = vadd.f32 %v2336_v43, %v1855_v27  ;;  %v1858_v9 = vadd.f32 %v2234_v49, %v1721_v63  ;;  %v1931_v32 = vmax.f32 %v1915_v20, 0.0  ;;  %2341 = vmatpush3.bf16.msra.mxu0 %v1936_v15 }
 0x3ce   :  { %2342 = vmatprep.subr.bf16.mxu0 %v2491_v14 }
 0x3cf   :  { %v1923_v34 = vadd.f32 %v2337_v4, %v1858_v9  ;;  %v1937_v52 = vpack.c.bf16 %v1931_v32, %v1930_v61  ;;  %v1932_v22 = vmax.f32 %v1920_v54, 0.0 }
 0x3d1   :  { %v1933_v44 = vmax.f32 %v1923_v34, 0.0  ;;  %2343 = vmatpush3.bf16.msra.mxu0 %v1937_v52 }
 0x3d2   :  { %2344 = vmatprep.subr.bf16.mxu0 %v2491_v14 }
 0x3d3   :  { %v1938_v29 = vpack.c.bf16 %v1933_v44, %v1932_v22 }
 0x3d5   :  { %2345 = vmatpush3.bf16.msra.mxu0 %v1938_v29 }
 0x3d8   :  { %2347 = vmatmul.mubr.msk.bf16.vlgmr.msra.gmra.mrb[88].mxu0 %vm1949_vm5, %v1934_v47 }
 0x4ab   :  { %v1987_v35 = vpop.f32.mrb[88].mxu0 }
 0x4ac   :  { %v1988_v38 = vadd.f32 %v1987_v35, %v1948_v60  ;;  %v2348_v8 = vpop.f32.mrb[89].mxu0 }
 0x4ad   :  { %v1990_v14 = vpop.f32.mrb[90].mxu0 }
 0x4ae   :  { %1993 = vst [vmem:[#allocation3] sm:$0x1] %v1988_v38  ;;  %v2349_v59 = vpop.f32.mrb[91].mxu0 }
 0x4af   :  { %2477 = shalt.err (!%p2474_p4)
}
 0x4b0   :  { %s2478_s2 = scalar_lea.hbm %s3363_s9, 16 }
 0x4b1   :  { %p2479_p5 = scmp.ne.s32.totalorder %s3363_s9, %s2478_s2  ;;  %p2482_p6 = scmp.lt.u32.totalorder %s2478_s2, %s3363_s9 }
 0x4b3   :  { %p2484_p7 = pnand %p2482_p6, %p2479_p5 }
 0x4b5   :  { %2487 = shalt.err (!%p2484_p7)
}
 0x4b6   :  { %2003 = dma.vmem_to_hbm [thread:$0]  %s2001_s14, 16, %s3363_s9, [#allocation4]  }
 0x4b7   :  { %2488 = dma.done.wait [#allocation4], 16  }
 0x4b8   :  { %2489 = vsyncadd [#allocation4], 4294967280 }
 0x4b9   :  { %2007 = vsyncpa [#allocation4], 1 }

</bundles_post_ra>
